<compile_context>
chip_gen: v7x
topology: tpu7x:2x2x1
jax: 0.10.0
libtpu: 0.0.40
codegen_flags: <defaults>
</compile_context>

<pallas_src>
import jax
import jax.numpy as jnp
from jax.experimental import pallas as pl
from jax.experimental.pallas import tpu as pltpu

# (in, out) feature sizes for the 6 Linear layers of the PyTorch Sequential.
LAYER_DIMS = [(11, 64), (64, 128), (128, 256), (256, 128), (128, 64), (64, 1)]

IN_PAD = 16    # input features 11 -> 16 (zero-padded x columns / W1 rows)
OUT_PAD = 128  # output features 1 -> 128 (zero-padded W6 cols -> lane-dense store)


def mlp_kernel(x_ref,
               w1, b1, w2, b2, w3, b3, w4, b4, w5, b5, w6, b6,
               o_ref):
    """One batch tile: 6 matmuls (bf16 operands, f32 accum) + 5 ReLUs."""
    h = x_ref[...].astype(jnp.float32)

    def linear(h_f32, w_ref, b_ref):
        # bf16 MXU operands, f32 accumulate; bias-add stays in f32 (VPU).
        y = jnp.dot(h_f32.astype(jnp.bfloat16), w_ref[...],
                    preferred_element_type=jnp.float32)
        return y + b_ref[...]

    h = jnp.maximum(linear(h, w1, b1), 0.0)
    h = jnp.maximum(linear(h, w2, b2), 0.0)
    h = jnp.maximum(linear(h, w3, b3), 0.0)
    h = jnp.maximum(linear(h, w4, b4), 0.0)
    h = jnp.maximum(linear(h, w5, b5), 0.0)
    # Final layer: no ReLU.  Output tile is lane-dense (TB, 128); only column 0
    # carries the real result (W6 / b6 are zero-padded along the output dim).
    o_ref[...] = linear(h, w6, b6).astype(o_ref.dtype)


def _prep_params(params):
    """Pad W1 rows 11->16 and W6/b6 cols 1->128; cast weights to bf16."""
    flat = []
    n = len(params)
    for idx, (w, b) in enumerate(params):
        w = jnp.asarray(w, jnp.float32)
        b = jnp.asarray(b, jnp.float32).reshape(1, -1)
        if idx == 0:
            w = jnp.pad(w, ((0, IN_PAD - w.shape[0]), (0, 0)))
        if idx == n - 1:
            w = jnp.pad(w, ((0, 0), (0, OUT_PAD - w.shape[1])))
            b = jnp.pad(b, ((0, 0), (0, OUT_PAD - b.shape[1])))
        flat.append(w.astype(jnp.bfloat16))   # bf16 MXU operand
        flat.append(b)                        # bias stays f32
    return flat


def mlp_forward(x, params, *, tb=256):
    """x: (B, 11) f32.  params: list of (W, b) with W (in, out), b (1, out)."""
    B, F = x.shape
    assert F == LAYER_DIMS[0][0], (B, F)
    flat = _prep_params(params)

    # Pad batch up to a multiple of the batch tile, features 11 -> 16.
    num_tiles = pl.cdiv(B, tb)
    B_pad = num_tiles * tb
    x_pad = jnp.zeros((B_pad, IN_PAD), jnp.float32).at[:B, :F].set(x)

    # Activation tiles stream over the grid; weights/biases are resident
    # (constant block index across all grid steps).
    const_map = lambda i: (0, 0)
    weight_specs = [pl.BlockSpec(a.shape, const_map) for a in flat]

    flops = 2 * B_pad * sum(w.shape[0] * w.shape[1] for w in flat[0::2])
    bytes_accessed = (x_pad.size * 4 + B_pad * OUT_PAD * 4
                      + sum(int(a.size) * a.dtype.itemsize for a in flat))

    out = pl.pallas_call(
        mlp_kernel,
        out_shape=jax.ShapeDtypeStruct((B_pad, OUT_PAD), jnp.float32),
        grid=(num_tiles,),
        in_specs=[pl.BlockSpec((tb, IN_PAD), lambda i: (i, 0))] + weight_specs,
        out_specs=pl.BlockSpec((tb, OUT_PAD), lambda i: (i, 0)),
        compiler_params=pltpu.CompilerParams(
            dimension_semantics=("parallel",)),
        cost_estimate=pl.CostEstimate(
            flops=flops, transcendentals=0, bytes_accessed=bytes_accessed),
    )(x_pad, *flat)

    # Real result: first B rows, column 0 of the lane-padded output.
    return out[:B, :1]


def init_params(key):
    """Kaiming-uniform-like init (matches args.init == 'ku' spirit)."""
    params = []
    for fan_in, fan_out in LAYER_DIMS:
        kw, kb, key = jax.random.split(key, 3)
        bound_w = jnp.sqrt(6.0 / fan_in)          # kaiming_uniform, relu gain
        w = jax.random.uniform(kw, (fan_in, fan_out), jnp.float32,
                               minval=-bound_w, maxval=bound_w)
        bound_b = 1.0 / jnp.sqrt(float(fan_in))   # PyTorch Linear bias default
        b = jax.random.uniform(kb, (1, fan_out), jnp.float32,
                               minval=-bound_b, maxval=bound_b)
        params.append((w, b))
    return params


def reference_forward(x, params):
    """Pure-JAX reference mirroring the kernel's bf16-operand / f32-accum math."""
    h = x.astype(jnp.float32)
    for i, (w, b) in enumerate(params):
        h = jnp.dot(h.astype(jnp.bfloat16), w.astype(jnp.bfloat16),
                    preferred_element_type=jnp.float32) + b.reshape(1, -1)
        if i < len(params) - 1:
            h = jnp.maximum(h, 0.0)
    return h


if __name__ == "__main__":
    key = jax.random.PRNGKey(0)
    kx, kp = jax.random.split(key)

    B = 8
    x = jax.random.normal(kx, (B, 11), dtype=jnp.float32)
    params = init_params(kp)

    out = mlp_forward(x, params)
    out = jax.block_until_ready(out)

    ref = reference_forward(x, params)
    assert out.shape == (B, 1), out.shape
    assert jnp.allclose(out, ref, atol=1e-3, rtol=1e-3), (out, ref)

    print("KERNEL_OK")
</pallas_src>

<mosaic_0001>
module attributes {stable_mosaic.version = 11 : i64} {
  func.func @mlp_kernel(%arg0: i32, %arg1: memref<256x16xf32, #tpu.memory_space<vmem>>, %arg2: memref<16x64xbf16, #tpu.memory_space<vmem>>, %arg3: memref<1x64xf32, #tpu.memory_space<vmem>>, %arg4: memref<64x128xbf16, #tpu.memory_space<vmem>>, %arg5: memref<1x128xf32, #tpu.memory_space<vmem>>, %arg6: memref<128x256xbf16, #tpu.memory_space<vmem>>, %arg7: memref<1x256xf32, #tpu.memory_space<vmem>>, %arg8: memref<256x128xbf16, #tpu.memory_space<vmem>>, %arg9: memref<1x128xf32, #tpu.memory_space<vmem>>, %arg10: memref<128x64xbf16, #tpu.memory_space<vmem>>, %arg11: memref<1x64xf32, #tpu.memory_space<vmem>>, %arg12: memref<64x128xbf16, #tpu.memory_space<vmem>>, %arg13: memref<1x128xf32, #tpu.memory_space<vmem>>, %arg14: memref<256x128xf32, #tpu.memory_space<vmem>>) attributes {dimension_semantics = [#tpu.dimension_semantics<parallel>], iteration_bounds = array<i64: 1>, scalar_prefetch = 0 : i64, scratch_operands = 0 : i64, tpu.core_type = #tpu.core_type<tc>, window_params = [{transform_indices = @transform_0, window_bounds = array<i64: 256, 16>}, {pipeline_mode = #tpu.pipeline_mode<synchronous>, transform_indices = @transform_1, window_bounds = array<i64: 16, 64>}, {pipeline_mode = #tpu.pipeline_mode<synchronous>, transform_indices = @transform_2, window_bounds = array<i64: 1, 64>}, {pipeline_mode = #tpu.pipeline_mode<synchronous>, transform_indices = @transform_3, window_bounds = array<i64: 64, 128>}, {pipeline_mode = #tpu.pipeline_mode<synchronous>, transform_indices = @transform_4, window_bounds = array<i64: 1, 128>}, {pipeline_mode = #tpu.pipeline_mode<synchronous>, transform_indices = @transform_5, window_bounds = array<i64: 128, 256>}, {pipeline_mode = #tpu.pipeline_mode<synchronous>, transform_indices = @transform_6, window_bounds = array<i64: 1, 256>}, {pipeline_mode = #tpu.pipeline_mode<synchronous>, transform_indices = @transform_7, window_bounds = array<i64: 256, 128>}, {pipeline_mode = #tpu.pipeline_mode<synchronous>, transform_indices = @transform_8, window_bounds = array<i64: 1, 128>}, {pipeline_mode = #tpu.pipeline_mode<synchronous>, transform_indices = @transform_9, window_bounds = array<i64: 128, 64>}, {pipeline_mode = #tpu.pipeline_mode<synchronous>, transform_indices = @transform_10, window_bounds = array<i64: 1, 64>}, {pipeline_mode = #tpu.pipeline_mode<synchronous>, transform_indices = @transform_11, window_bounds = array<i64: 64, 128>}, {pipeline_mode = #tpu.pipeline_mode<synchronous>, transform_indices = @transform_12, window_bounds = array<i64: 1, 128>}, {transform_indices = @transform_13, window_bounds = array<i64: 256, 128>}]} {
    %c0 = arith.constant 0 : index
    %c0_0 = arith.constant 0 : index
    %0 = vector.load %arg1[%c0, %c0_0] : memref<256x16xf32, #tpu.memory_space<vmem>>, vector<256x16xf32>
    %1 = arith.truncf %0 : vector<256x16xf32> to vector<256x16xbf16>
    %c0_1 = arith.constant 0 : index
    %c0_2 = arith.constant 0 : index
    %2 = vector.load %arg2[%c0_1, %c0_2] : memref<16x64xbf16, #tpu.memory_space<vmem>>, vector<16x64xbf16>
    %cst = arith.constant dense<0.000000e+00> : vector<256x64xf32>
    %3 = tpu.matmul %1, %2, %cst {dimension_numbers = #tpu.dot_dimension_numbers<[1], [0], [0], [1], [0, 0, 1, 1], [], []>} : vector<256x16xbf16>, vector<16x64xbf16>, vector<256x64xf32> -> vector<256x64xf32>
    %c0_3 = arith.constant 0 : index
    %c0_4 = arith.constant 0 : index
    %4 = vector.load %arg3[%c0_3, %c0_4] : memref<1x64xf32, #tpu.memory_space<vmem>>, vector<1x64xf32>
    %5 = vector.broadcast %4 : vector<1x64xf32> to vector<256x64xf32>
    %6 = arith.addf %3, %5 : vector<256x64xf32>
    %cst_5 = arith.constant 0.000000e+00 : f32
    %7 = vector.broadcast %cst_5 : f32 to vector<256x64xf32>
    %8 = arith.maximumf %6, %7 : vector<256x64xf32>
    %9 = arith.truncf %8 : vector<256x64xf32> to vector<256x64xbf16>
    %c0_6 = arith.constant 0 : index
    %c0_7 = arith.constant 0 : index
    %10 = vector.load %arg4[%c0_6, %c0_7] : memref<64x128xbf16, #tpu.memory_space<vmem>>, vector<64x128xbf16>
    %cst_8 = arith.constant dense<0.000000e+00> : vector<256x128xf32>
    %11 = tpu.matmul %9, %10, %cst_8 {dimension_numbers = #tpu.dot_dimension_numbers<[1], [0], [0], [1], [0, 0, 1, 1], [], []>} : vector<256x64xbf16>, vector<64x128xbf16>, vector<256x128xf32> -> vector<256x128xf32>
    %c0_9 = arith.constant 0 : index
    %c0_10 = arith.constant 0 : index
    %12 = vector.load %arg5[%c0_9, %c0_10] : memref<1x128xf32, #tpu.memory_space<vmem>>, vector<1x128xf32>
    %13 = vector.broadcast %12 : vector<1x128xf32> to vector<256x128xf32>
    %14 = arith.addf %11, %13 : vector<256x128xf32>
    %cst_11 = arith.constant 0.000000e+00 : f32
    %15 = vector.broadcast %cst_11 : f32 to vector<256x128xf32>
    %16 = arith.maximumf %14, %15 : vector<256x128xf32>
    %17 = arith.truncf %16 : vector<256x128xf32> to vector<256x128xbf16>
    %c0_12 = arith.constant 0 : index
    %c0_13 = arith.constant 0 : index
    %18 = vector.load %arg6[%c0_12, %c0_13] : memref<128x256xbf16, #tpu.memory_space<vmem>>, vector<128x256xbf16>
    %cst_14 = arith.constant dense<0.000000e+00> : vector<256x256xf32>
    %19 = tpu.matmul %17, %18, %cst_14 {dimension_numbers = #tpu.dot_dimension_numbers<[1], [0], [0], [1], [0, 0, 1, 1], [], []>} : vector<256x128xbf16>, vector<128x256xbf16>, vector<256x256xf32> -> vector<256x256xf32>
    %c0_15 = arith.constant 0 : index
    %c0_16 = arith.constant 0 : index
    %20 = vector.load %arg7[%c0_15, %c0_16] : memref<1x256xf32, #tpu.memory_space<vmem>>, vector<1x256xf32>
    %21 = vector.broadcast %20 : vector<1x256xf32> to vector<256x256xf32>
    %22 = arith.addf %19, %21 : vector<256x256xf32>
    %cst_17 = arith.constant 0.000000e+00 : f32
    %23 = vector.broadcast %cst_17 : f32 to vector<256x256xf32>
    %24 = arith.maximumf %22, %23 : vector<256x256xf32>
    %25 = arith.truncf %24 : vector<256x256xf32> to vector<256x256xbf16>
    %c0_18 = arith.constant 0 : index
    %c0_19 = arith.constant 0 : index
    %26 = vector.load %arg8[%c0_18, %c0_19] : memref<256x128xbf16, #tpu.memory_space<vmem>>, vector<256x128xbf16>
    %cst_20 = arith.constant dense<0.000000e+00> : vector<256x128xf32>
    %27 = tpu.matmul %25, %26, %cst_20 {dimension_numbers = #tpu.dot_dimension_numbers<[1], [0], [0], [1], [0, 0, 1, 1], [], []>} : vector<256x256xbf16>, vector<256x128xbf16>, vector<256x128xf32> -> vector<256x128xf32>
    %c0_21 = arith.constant 0 : index
    %c0_22 = arith.constant 0 : index
    %28 = vector.load %arg9[%c0_21, %c0_22] : memref<1x128xf32, #tpu.memory_space<vmem>>, vector<1x128xf32>
    %29 = vector.broadcast %28 : vector<1x128xf32> to vector<256x128xf32>
    %30 = arith.addf %27, %29 : vector<256x128xf32>
    %cst_23 = arith.constant 0.000000e+00 : f32
    %31 = vector.broadcast %cst_23 : f32 to vector<256x128xf32>
    %32 = arith.maximumf %30, %31 : vector<256x128xf32>
    %33 = arith.truncf %32 : vector<256x128xf32> to vector<256x128xbf16>
    %c0_24 = arith.constant 0 : index
    %c0_25 = arith.constant 0 : index
    %34 = vector.load %arg10[%c0_24, %c0_25] : memref<128x64xbf16, #tpu.memory_space<vmem>>, vector<128x64xbf16>
    %cst_26 = arith.constant dense<0.000000e+00> : vector<256x64xf32>
    %35 = tpu.matmul %33, %34, %cst_26 {dimension_numbers = #tpu.dot_dimension_numbers<[1], [0], [0], [1], [0, 0, 1, 1], [], []>} : vector<256x128xbf16>, vector<128x64xbf16>, vector<256x64xf32> -> vector<256x64xf32>
    %c0_27 = arith.constant 0 : index
    %c0_28 = arith.constant 0 : index
    %36 = vector.load %arg11[%c0_27, %c0_28] : memref<1x64xf32, #tpu.memory_space<vmem>>, vector<1x64xf32>
    %37 = vector.broadcast %36 : vector<1x64xf32> to vector<256x64xf32>
    %38 = arith.addf %35, %37 : vector<256x64xf32>
    %cst_29 = arith.constant 0.000000e+00 : f32
    %39 = vector.broadcast %cst_29 : f32 to vector<256x64xf32>
    %40 = arith.maximumf %38, %39 : vector<256x64xf32>
    %41 = arith.truncf %40 : vector<256x64xf32> to vector<256x64xbf16>
    %c0_30 = arith.constant 0 : index
    %c0_31 = arith.constant 0 : index
    %42 = vector.load %arg12[%c0_30, %c0_31] : memref<64x128xbf16, #tpu.memory_space<vmem>>, vector<64x128xbf16>
    %cst_32 = arith.constant dense<0.000000e+00> : vector<256x128xf32>
    %43 = tpu.matmul %41, %42, %cst_32 {dimension_numbers = #tpu.dot_dimension_numbers<[1], [0], [0], [1], [0, 0, 1, 1], [], []>} : vector<256x64xbf16>, vector<64x128xbf16>, vector<256x128xf32> -> vector<256x128xf32>
    %c0_33 = arith.constant 0 : index
    %c0_34 = arith.constant 0 : index
    %44 = vector.load %arg13[%c0_33, %c0_34] : memref<1x128xf32, #tpu.memory_space<vmem>>, vector<1x128xf32>
    %45 = vector.broadcast %44 : vector<1x128xf32> to vector<256x128xf32>
    %46 = arith.addf %43, %45 : vector<256x128xf32>
    %c0_35 = arith.constant 0 : index
    %c0_36 = arith.constant 0 : index
    %47 = vector.load %arg14[%c0_35, %c0_36] : memref<256x128xf32, #tpu.memory_space<vmem>>, vector<256x128xf32>
    tpu.vector_store %arg14[%c0_35, %c0_36], %46 {strides = array<i32>} : memref<256x128xf32, #tpu.memory_space<vmem>>, vector<256x128xf32>,
    return
  }
  func.func @transform_0(%arg0: i32) -> (i32, i32) {
    %c0_i32 = arith.constant 0 : i32
    %c0_i32_0 = arith.constant 0 : i32
    return %arg0, %c0_i32 : i32, i32
  }
  func.func @transform_1(%arg0: i32) -> (i32, i32) {
    %c0_i32 = arith.constant 0 : i32
    %c0_i32_0 = arith.constant 0 : i32
    %c0_i32_1 = arith.constant 0 : i32
    return %c0_i32, %c0_i32_0 : i32, i32
  }
  func.func @transform_2(%arg0: i32) -> (i32, i32) {
    %c0_i32 = arith.constant 0 : i32
    %c0_i32_0 = arith.constant 0 : i32
    %c0_i32_1 = arith.constant 0 : i32
    return %c0_i32, %c0_i32_0 : i32, i32
  }
  func.func @transform_3(%arg0: i32) -> (i32, i32) {
    %c0_i32 = arith.constant 0 : i32
    %c0_i32_0 = arith.constant 0 : i32
    %c0_i32_1 = arith.constant 0 : i32
    return %c0_i32, %c0_i32_0 : i32, i32
  }
  func.func @transform_4(%arg0: i32) -> (i32, i32) {
    %c0_i32 = arith.constant 0 : i32
    %c0_i32_0 = arith.constant 0 : i32
    %c0_i32_1 = arith.constant 0 : i32
    return %c0_i32, %c0_i32_0 : i32, i32
  }
  func.func @transform_5(%arg0: i32) -> (i32, i32) {
    %c0_i32 = arith.constant 0 : i32
    %c0_i32_0 = arith.constant 0 : i32
    %c0_i32_1 = arith.constant 0 : i32
    return %c0_i32, %c0_i32_0 : i32, i32
  }
  func.func @transform_6(%arg0: i32) -> (i32, i32) {
    %c0_i32 = arith.constant 0 : i32
    %c0_i32_0 = arith.constant 0 : i32
    %c0_i32_1 = arith.constant 0 : i32
    return %c0_i32, %c0_i32_0 : i32, i32
  }
  func.func @transform_7(%arg0: i32) -> (i32, i32) {
    %c0_i32 = arith.constant 0 : i32
    %c0_i32_0 = arith.constant 0 : i32
    %c0_i32_1 = arith.constant 0 : i32
    return %c0_i32, %c0_i32_0 : i32, i32
  }
  func.func @transform_8(%arg0: i32) -> (i32, i32) {
    %c0_i32 = arith.constant 0 : i32
    %c0_i32_0 = arith.constant 0 : i32
    %c0_i32_1 = arith.constant 0 : i32
    return %c0_i32, %c0_i32_0 : i32, i32
  }
  func.func @transform_9(%arg0: i32) -> (i32, i32) {
    %c0_i32 = arith.constant 0 : i32
    %c0_i32_0 = arith.constant 0 : i32
    %c0_i32_1 = arith.constant 0 : i32
    return %c0_i32, %c0_i32_0 : i32, i32
  }
  func.func @transform_10(%arg0: i32) -> (i32, i32) {
    %c0_i32 = arith.constant 0 : i32
    %c0_i32_0 = arith.constant 0 : i32
    %c0_i32_1 = arith.constant 0 : i32
    return %c0_i32, %c0_i32_0 : i32, i32
  }
  func.func @transform_11(%arg0: i32) -> (i32, i32) {
    %c0_i32 = arith.constant 0 : i32
    %c0_i32_0 = arith.constant 0 : i32
    %c0_i32_1 = arith.constant 0 : i32
    return %c0_i32, %c0_i32_0 : i32, i32
  }
  func.func @transform_12(%arg0: i32) -> (i32, i32) {
    %c0_i32 = arith.constant 0 : i32
    %c0_i32_0 = arith.constant 0 : i32
    %c0_i32_1 = arith.constant 0 : i32
    return %c0_i32, %c0_i32_0 : i32, i32
  }
  func.func @transform_13(%arg0: i32) -> (i32, i32) {
    %c0_i32 = arith.constant 0 : i32
    %c0_i32_0 = arith.constant 0 : i32
    return %arg0, %c0_i32 : i32, i32
  }
}

</mosaic_0001>

<bundles_post_ra>
// kernel: tpu_custom_call.1
= control target key start
LH: loop header
LB: loop body
LE: loop exit
PB: predicated region body
PF: predicated region fallthrough
CT: control target
= control target key end

     0   :  { %vm109_vm0 = vcmask 130048   ;;  %s3175_s0 = inlined_call_operand.vmem [shape: f32[256,16], index: 0, kind: input, shape index: {}]   ;;  %s3176_s1 = inlined_call_operand.vmem [shape: bf16[16,64], index: 1, kind: input, shape index: {}]   ;;  %s3177_s2 = inlined_call_operand.vmem [shape: f32[1,64], index: 2, kind: input, shape index: {}]   ;;  %s3178_s3 = inlined_call_operand.vmem [shape: bf16[64,128], index: 3, kind: input, shape index: {}]   ;;  %s3179_s4 = inlined_call_operand.vmem [shape: f32[1,128], index: 4, kind: input, shape index: {}]   ;;  %s3180_s5 = inlined_call_operand.vmem [shape: bf16[128,256], index: 5, kind: input, shape index: {}]   ;;  %s3181_s6 = inlined_call_operand.vmem [shape: f32[1,256], index: 6, kind: input, shape index: {}]   ;;  %s3182_s7 = inlined_call_operand.vmem [shape: bf16[256,128], index: 7, kind: input, shape index: {}]   ;;  %s3183_s8 = inlined_call_operand.vmem [shape: f32[1,128], index: 8, kind: input, shape index: {}]   ;;  %s3184_s9 = inlined_call_operand.vmem [shape: bf16[128,64], index: 9, kind: input, shape index: {}]   ;;  %s3185_s10 = inlined_call_operand.vmem [shape: f32[1,64], index: 10, kind: input, shape index: {}]   ;;  %s3186_s11 = inlined_call_operand.vmem [shape: bf16[64,128], index: 11, kind: input, shape index: {}]   ;;  %s3187_s12 = inlined_call_operand.vmem [shape: f32[1,128], index: 12, kind: input, shape index: {}]   ;;  %s3188_s13 = inlined_call_operand.hbm [shape: f32[256,128], index: 13, kind: output, shape index: {}]  }
   0x1   :  { %v2442_v0 = vld [vmem:[%s3176_s1] sm:$0xff]   ;;  %v47_v2 = vld [vmem:[%s3175_s0 + $0x8] sm:$0xff]  ;;  %v48_v3 = vld [vmem:[%s3175_s0 + $0x10] sm:$0xff] }
   0x2   :  { %v46_v1 = vld [vmem:[%s3175_s0] sm:$0xff]  ;;  %2276 = vmatprep.subr.bf16.mxu0 %v2442_v0  ;;  %v49_v5 = vld [vmem:[%s3175_s0 + $0x18] sm:$0xff]  ;;  %v51_v7 = vld [vmem:[%s3175_s0 + $0x28] sm:$0xff] }
   0x3   :  { %v78_v4 = vpack.c.bf16 %v47_v2, %v46_v1  ;;  %v50_v6 = vld [vmem:[%s3175_s0 + $0x20] sm:$0xff]  ;;  %2277 = vmatpush3.bf16.msra.mxu0 %v2442_v0  ;;  %v79_v8 = vpack.c.bf16 %v49_v5, %v48_v3  ;;  %v52_v10 = vld [vmem:[%s3175_s0 + $0x30] sm:$0xff]  ;;  %v53_v11 = vld [vmem:[%s3175_s0 + $0x38] sm:$0xff] }
   0x4   :  { %v80_v9 = vpack.c.bf16 %v51_v7, %v50_v6  ;;  %v54_v12 = vld [vmem:[%s3175_s0 + $0x40] sm:$0xff]  ;;  %v55_v13 = vld [vmem:[%s3175_s0 + $0x48] sm:$0xff]  ;;  %v81_v14 = vpack.c.bf16 %v53_v11, %v52_v10  ;;  %v56_v17 = vld [vmem:[%s3175_s0 + $0x50] sm:$0xff] }
   0x5   :  { %2278 = vmatprep.mubr.msk.bf16.mxu0 %vm109_vm0, %v78_v4  ;;  %v82_v15 = vpack.c.bf16 %v55_v13, %v54_v12  ;;  %v2443_v16 = vld [vmem:[%s3178_s3] sm:$0xff]   ;;  %v57_v18 = vld [vmem:[%s3175_s0 + $0x58] sm:$0xff]  ;;  %v2444_v19 = vld [vmem:[%s3178_s3 + $0x8] sm:$0xff]  }
   0x6   :  { %2279 = vmatmul.mubr.msk.bf16.vlgmr.msra.gmra.mrb[0].mxu0 %vm109_vm0, %v79_v8  ;;  %v58_v20 = vld [vmem:[%s3175_s0 + $0x60] sm:$0xff]  ;;  %v59_v21 = vld [vmem:[%s3175_s0 + $0x68] sm:$0xff]  ;;  %2310 = vmatprep.subr.bf16.mxu1 %v2443_v16  ;;  %v83_v22 = vpack.c.bf16 %v57_v18, %v56_v17  ;;  %v60_v24 = vld [vmem:[%s3175_s0 + $0x70] sm:$0xff] }
   0x7   :  { %2282 = vmatprep.mubr.msk.bf16.mxu0 %vm109_vm0, %v80_v9  ;;  %2311 = vmatpush3.bf16.msra.mxu1 %v2443_v16  ;;  %v84_v23 = vpack.c.bf16 %v59_v21, %v58_v20  ;;  %v61_v25 = vld [vmem:[%s3175_s0 + $0x78] sm:$0xff]  ;;  %v62_v26 = vld [vmem:[%s3175_s0 + $0x80] sm:$0xff]  ;;  %v63_v27 = vld [vmem:[%s3175_s0 + $0x88] sm:$0xff] }
   0x8   :  { %2312 = vmatprep.subr.bf16.mxu1 %v2444_v19  ;;  %v85_v28 = vpack.c.bf16 %v61_v25, %v60_v24  ;;  %v86_v29 = vpack.c.bf16 %v63_v27, %v62_v26  ;;  %v64_v30 = vld [vmem:[%s3175_s0 + $0x90] sm:$0xff]  ;;  %v65_v31 = vld [vmem:[%s3175_s0 + $0x98] sm:$0xff]  ;;  %v66_v32 = vld [vmem:[%s3175_s0 + $0xa0] sm:$0xff] }
   0x9   :  { %v67_v33 = vld [vmem:[%s3175_s0 + $0xa8] sm:$0xff]  ;;  %v87_v34 = vpack.c.bf16 %v65_v31, %v64_v30  ;;  %v68_v36 = vld [vmem:[%s3175_s0 + $0xb0] sm:$0xff]  ;;  %v69_v37 = vld [vmem:[%s3175_s0 + $0xb8] sm:$0xff] }
   0xa   :  { %v88_v35 = vpack.c.bf16 %v67_v33, %v66_v32 }
   0xb   :  { %2313 = vmatpush3.bf16.msra.mxu1 %v2444_v19 }
   0xe   :  { %2283 = vmatmul.mubr.msk.bf16.gmra.mrb[4].mxu0 %vm109_vm0, %v81_v14 }
   0xf   :  { %2286 = vmatprep.mubr.msk.bf16.mxu0 %vm109_vm0, %v82_v15 }
  0x16   :  { %2287 = vmatmul.mubr.msk.bf16.gmra.mrb[8].mxu0 %vm109_vm0, %v83_v22 }
  0x17   :  { %2290 = vmatprep.mubr.msk.bf16.mxu0 %vm109_vm0, %v84_v23 }
  0x1e   :  { %2291 = vmatmul.mubr.msk.bf16.gmra.mrb[12].mxu0 %vm109_vm0, %v85_v28 }
  0x1f   :  { %2294 = vmatprep.mubr.msk.bf16.mxu0 %vm109_vm0, %v86_v29 }
  0x26   :  { %2295 = vmatmul.mubr.msk.bf16.gmra.mrb[16].mxu0 %vm109_vm0, %v87_v34 }
  0x27   :  { %2298 = vmatprep.mubr.msk.bf16.mxu0 %vm109_vm0, %v88_v35 }
  0x28   :  { %18 = vsyncpa [#allocation3], 0  ;;  %v70_v38 = vld [vmem:[%s3175_s0 + $0xc0] sm:$0xff]  ;;  %v71_v39 = vld [vmem:[%s3175_s0 + $0xc8] sm:$0xff]  ;;  %v89_v40 = vpack.c.bf16 %v69_v37, %v68_v36  ;;  %vm406_vm1 = vcmask 523264  }
  0x29   :  { %v90_v41 = vpack.c.bf16 %v71_v39, %v70_v38  ;;  %v72_v42 = vld [vmem:[%s3175_s0 + $0xd0] sm:$0xff]  ;;  %v73_v43 = vld [vmem:[%s3175_s0 + $0xd8] sm:$0xff]  ;;  %v74_v44 = vld [vmem:[%s3175_s0 + $0xe0] sm:$0xff] }
  0x2a   :  { %v75_v45 = vld [vmem:[%s3175_s0 + $0xe8] sm:$0xff]  ;;  %v91_v46 = vpack.c.bf16 %v73_v43, %v72_v42  ;;  %v76_v48 = vld [vmem:[%s3175_s0 + $0xf0] sm:$0xff]  ;;  %v77_v49 = vld [vmem:[%s3175_s0 + $0xf8] sm:$0xff] }
  0x2b   :  { %v92_v47 = vpack.c.bf16 %v75_v45, %v74_v44  ;;  %v93_v50 = vpack.c.bf16 %v77_v49, %v76_v48  ;;  %v2445_v51 = vld [vmem:[%s3178_s3 + $0x10] sm:$0xff]   ;;  %v2446_v52 = vld [vmem:[%s3178_s3 + $0x18] sm:$0xff]   ;;  %v2447_v53 = vld [vmem:[%s3180_s5] ss:$8 sps:$4 sm:$0xff]  }
  0x2c   :  { %2314 = vmatprep.subr.bf16.mxu1 %v2445_v51  ;;  %v2449_v54 = vld [vmem:[%s3180_s5 + $0x4] ss:$8 sps:$4 sm:$0xff]   ;;  %v2452_v55 = vld [vmem:[%s3180_s5 + $0x14] ss:$8 sps:$4 sm:$0xff]   ;;  %v2450_v56 = vld [vmem:[%s3180_s5 + $0x10] ss:$8 sps:$4 sm:$0xff]  }
  0x2d   :  { %2315 = vmatpush3.bf16.msra.mxu1 %v2445_v51  ;;  %772 = vmatprep.subr.bf16.mxu0 %v2449_v54  ;;  %v2455_v57 = vld [vmem:[%s3180_s5 + $0x24] ss:$8 sps:$4 sm:$0xff]   ;;  %v2453_v58 = vld [vmem:[%s3180_s5 + $0x20] ss:$8 sps:$4 sm:$0xff]   ;;  %v2458_v59 = vld [vmem:[%s3180_s5 + $0x34] ss:$8 sps:$4 sm:$0xff]  }
  0x2e   :  { %2299 = vmatmul.mubr.msk.bf16.gmra.mrb[20].mxu0 %vm109_vm0, %v89_v40  ;;  %2316 = vmatprep.subr.bf16.mxu1 %v2446_v52  ;;  %v2456_v60 = vld [vmem:[%s3180_s5 + $0x30] ss:$8 sps:$4 sm:$0xff]   ;;  %v2461_v61 = vld [vmem:[%s3180_s5 + $0x44] ss:$8 sps:$4 sm:$0xff]   ;;  %v2459_v62 = vld [vmem:[%s3180_s5 + $0x40] ss:$8 sps:$4 sm:$0xff]  }
  0x2f   :  { %2302 = vmatprep.mubr.msk.bf16.mxu0 %vm109_vm0, %v90_v41  ;;  %773 = vmatpush1.bf16.msra.mxu0 %v2447_v53  ;;  %v2464_v63 = vld [vmem:[%s3180_s5 + $0x54] ss:$8 sps:$4 sm:$0xff]   ;;  %v2462_v0 = vld [vmem:[%s3180_s5 + $0x50] ss:$8 sps:$4 sm:$0xff]   ;;  %v2467_v1 = vld [vmem:[%s3180_s5 + $0x64] ss:$8 sps:$4 sm:$0xff]  }
  0x30   :  { %774 = vmatprep.subr.bf16.mxu0 %v2452_v55  ;;  %v2465_v2 = vld [vmem:[%s3180_s5 + $0x60] ss:$8 sps:$4 sm:$0xff]  }
  0x31   :  { %2317 = vmatpush3.bf16.msra.mxu1 %v2446_v52  ;;  %v2769_v3 = vld [vmem:[%s3177_s2] ss:$0 sm:$0xff] }
  0x33   :  { %775 = vmatpush1.bf16.msra.mxu0 %v2450_v56 }
  0x34   :  { %776 = vmatprep.subr.bf16.mxu0 %v2455_v57 }
  0x36   :  { %2303 = vmatmul.mubr.msk.bf16.gmra.mrb[24].mxu0 %vm109_vm0, %v91_v46 }
  0x37   :  { %2306 = vmatprep.mubr.msk.bf16.mxu0 %vm109_vm0, %v92_v47  ;;  %777 = vmatpush1.bf16.msra.mxu0 %v2453_v58 }
  0x38   :  { %778 = vmatprep.subr.bf16.mxu0 %v2458_v59 }
  0x3b   :  { %779 = vmatpush1.bf16.msra.mxu0 %v2456_v60 }
  0x3c   :  { %780 = vmatprep.subr.bf16.mxu0 %v2461_v61 }
  0x3e   :  { %2307 = vmatmul.mubr.msk.bf16.gmra.mrb[28].mxu0 %vm109_vm0, %v93_v50 }
  0x3f   :  { %781 = vmatpush1.bf16.msra.mxu0 %v2459_v62 }
  0x40   :  { %782 = vmatprep.subr.bf16.mxu0 %v2464_v63 }
  0x43   :  { %783 = vmatpush1.bf16.msra.mxu0 %v2462_v0 }
  0x44   :  { %784 = vmatprep.subr.bf16.mxu0 %v2467_v1 }
  0x47   :  { %785 = vmatpush1.bf16.msra.mxu0 %v2465_v2 }
  0xd9   :  { %v2280_v4 = vpop.f32.mrb[0].mxu0 }
  0xda   :  { %v201_v5 = vadd.f32 %v2280_v4, %v2769_v3  ;;  %v192_v6 = vpop.f32.mrb[1].mxu0 }
  0xdb   :  { %v193_v7 = vadd.f32 %v2769_v3, %v192_v6  ;;  %v2281_v8 = vpop.f32.mrb[2].mxu0 }
  0xdc   :  { %v204_v9 = vadd.f32 %v2281_v8, %v2769_v3  ;;  %v195_v10 = vpop.f32.mrb[3].mxu0  ;;  %v321_v12 = vmax.f32 %v201_v5, 0.0 }
  0xdd   :  { %v196_v11 = vadd.f32 %v2769_v3, %v195_v10  ;;  %v319_v14 = vmax.f32 %v193_v7, 0.0 }
  0xde   :  { %v322_v13 = vmax.f32 %v204_v9, 0.0 }
  0xdf   :  { %v320_v15 = vmax.f32 %v196_v11, 0.0 }
  0xe0   :  { %v352_v16 = vpack.c.bf16 %v322_v13, %v321_v12 }
  0xe1   :  { %v2284_v17 = vpop.f32.mrb[4].mxu0  ;;  %v351_v18 = vpack.c.bf16 %v320_v15, %v319_v14 }
  0xe2   :  { %v217_v19 = vadd.f32 %v2284_v17, %v2769_v3  ;;  %v208_v20 = vpop.f32.mrb[5].mxu0 }
  0xe3   :  { %v209_v21 = vadd.f32 %v2769_v3, %v208_v20  ;;  %2318 = vmatprep.mubr.msk.bf16.mxu1 %vm406_vm1, %v351_v18  ;;  %v2285_v22 = vpop.f32.mrb[6].mxu0 }
  0xe4   :  { %v325_v23 = vmax.f32 %v217_v19, 0.0  ;;  %v220_v24 = vadd.f32 %v2285_v22, %v2769_v3  ;;  %2319 = vmatmul.mubr.msk.bf16.vlgmr.msra.gmra.mrb[0].mxu1 %vm406_vm1, %v352_v16  ;;  %v211_v25 = vpop.f32.mrb[7].mxu0 }
  0xe5   :  { %v323_v26 = vmax.f32 %v209_v21, 0.0  ;;  %v212_v27 = vadd.f32 %v2769_v3, %v211_v25 }
  0xe6   :  { %v326_v28 = vmax.f32 %v220_v24, 0.0 }
  0xe7   :  { %v324_v29 = vmax.f32 %v212_v27, 0.0 }
  0xe8   :  { %v354_v30 = vpack.c.bf16 %v326_v28, %v325_v23 }
  0xe9   :  { %v353_v31 = vpack.c.bf16 %v324_v29, %v323_v26  ;;  %v2288_v32 = vpop.f32.mrb[8].mxu0 }
  0xea   :  { %v233_v33 = vadd.f32 %v2288_v32, %v2769_v3  ;;  %v224_v34 = vpop.f32.mrb[9].mxu0 }
  0xeb   :  { %2322 = vmatprep.mubr.msk.bf16.mxu1 %vm406_vm1, %v353_v31  ;;  %v225_v35 = vadd.f32 %v2769_v3, %v224_v34  ;;  %v2289_v36 = vpop.f32.mrb[10].mxu0 }
  0xec   :  { %2323 = vmatmul.mubr.msk.bf16.gmra.mrb[4].mxu1 %vm406_vm1, %v354_v30  ;;  %v329_v37 = vmax.f32 %v233_v33, 0.0  ;;  %v236_v38 = vadd.f32 %v2289_v36, %v2769_v3  ;;  %v227_v39 = vpop.f32.mrb[11].mxu0 }
  0xed   :  { %v327_v40 = vmax.f32 %v225_v35, 0.0  ;;  %v228_v41 = vadd.f32 %v2769_v3, %v227_v39 }
  0xee   :  { %v330_v42 = vmax.f32 %v236_v38, 0.0 }
  0xef   :  { %v328_v43 = vmax.f32 %v228_v41, 0.0 }
  0xf0   :  { %v356_v44 = vpack.c.bf16 %v330_v42, %v329_v37 }
  0xf1   :  { %v355_v45 = vpack.c.bf16 %v328_v43, %v327_v40  ;;  %v2292_v46 = vpop.f32.mrb[12].mxu0 }
  0xf2   :  { %v249_v47 = vadd.f32 %v2292_v46, %v2769_v3  ;;  %v240_v48 = vpop.f32.mrb[13].mxu0 }
  0xf3   :  { %2326 = vmatprep.mubr.msk.bf16.mxu1 %vm406_vm1, %v355_v45  ;;  %v241_v49 = vadd.f32 %v2769_v3, %v240_v48  ;;  %v2293_v50 = vpop.f32.mrb[14].mxu0 }
  0xf4   :  { %2327 = vmatmul.mubr.msk.bf16.gmra.mrb[8].mxu1 %vm406_vm1, %v356_v44  ;;  %v333_v51 = vmax.f32 %v249_v47, 0.0  ;;  %v252_v52 = vadd.f32 %v2293_v50, %v2769_v3  ;;  %v243_v53 = vpop.f32.mrb[15].mxu0 }
  0xf5   :  { %v331_v54 = vmax.f32 %v241_v49, 0.0  ;;  %v244_v55 = vadd.f32 %v2769_v3, %v243_v53  ;;  %v2468_v53 = vld [vmem:[%s3180_s5 + $0x70] ss:$8 sps:$4 sm:$0xff]  }
  0xf6   :  { %v334_v56 = vmax.f32 %v252_v52, 0.0 }
  0xf7   :  { %v332_v57 = vmax.f32 %v244_v55, 0.0  ;;  %v2523_v55 = vmov 0  }
  0xf8   :  { %v358_v58 = vpack.c.bf16 %v334_v56, %v333_v51  ;;  %804 = vmatprep.mubr.bf16.mxu0 %v2523_v55 }
  0xf9   :  { %v357_v59 = vpack.c.bf16 %v332_v57, %v331_v54  ;;  %v2296_v60 = vpop.f32.mrb[16].mxu0  ;;  %v2470_v54 = vld [vmem:[%s3180_s5 + $0x74] ss:$8 sps:$4 sm:$0xff]  }
  0xfa   :  { %v265_v61 = vadd.f32 %v2296_v60, %v2769_v3  ;;  %v256_v62 = vpop.f32.mrb[17].mxu0  ;;  %786 = vmatprep.subr.bf16.mxu0 %v2470_v54 }
  0xfb   :  { %2330 = vmatprep.mubr.msk.bf16.mxu1 %vm406_vm1, %v357_v59  ;;  %v257_v63 = vadd.f32 %v2769_v3, %v256_v62  ;;  %v2297_v0 = vpop.f32.mrb[18].mxu0  ;;  %787 = vmatpush1.bf16.msra.mxu0 %v2468_v53  ;;  %v2472_v62 = vld [vmem:[%s3182_s7] sm:$0xff]  }
  0xfc   :  { %2331 = vmatmul.mubr.msk.bf16.gmra.mrb[12].mxu1 %vm406_vm1, %v358_v58  ;;  %v337_v1 = vmax.f32 %v265_v61, 0.0  ;;  %v268_v2 = vadd.f32 %v2297_v0, %v2769_v3  ;;  %v259_v4 = vpop.f32.mrb[19].mxu0  ;;  %v2471_v61 = vld [vmem:[%s3182_s7 + $0x40] sm:$0xff]  }
  0xfd   :  { %v335_v5 = vmax.f32 %v257_v63, 0.0  ;;  %v260_v6 = vadd.f32 %v2769_v3, %v259_v4  ;;  %v2473_v63 = vld [vmem:[%s3182_s7 + $0x48] sm:$0xff]   ;;  %2120 = vmatprep.subr.bf16.mxu1 %v2471_v61 }
  0xfe   :  { %v338_v7 = vmax.f32 %v268_v2, 0.0  ;;  %2121 = vmatpush3.bf16.msra.mxu1 %v2472_v62 }
  0xff   :  { %v336_v8 = vmax.f32 %v260_v6, 0.0  ;;  %v2474_v6 = vld [vmem:[%s3182_s7 + $0x8] sm:$0xff]   ;;  %2122 = vmatprep.subr.bf16.mxu1 %v2473_v63 }
 0x100   :  { %v360_v9 = vpack.c.bf16 %v338_v7, %v337_v1 }
 0x101   :  { %v359_v10 = vpack.c.bf16 %v336_v8, %v335_v5  ;;  %v2300_v11 = vpop.f32.mrb[20].mxu0 }
 0x102   :  { %v281_v12 = vadd.f32 %v2300_v11, %v2769_v3  ;;  %v272_v13 = vpop.f32.mrb[21].mxu0  ;;  %2123 = vmatpush3.bf16.msra.mxu1 %v2474_v6 }
 0x103   :  { %2334 = vmatprep.mubr.msk.bf16.mxu1 %vm406_vm1, %v359_v10  ;;  %v273_v14 = vadd.f32 %v2769_v3, %v272_v13  ;;  %v2301_v15 = vpop.f32.mrb[22].mxu0 }
 0x104   :  { %2335 = vmatmul.mubr.msk.bf16.gmra.mrb[16].mxu1 %vm406_vm1, %v360_v9  ;;  %v341_v16 = vmax.f32 %v281_v12, 0.0  ;;  %v284_v17 = vadd.f32 %v2301_v15, %v2769_v3  ;;  %v275_v18 = vpop.f32.mrb[23].mxu0  ;;  %v2475_v9 = vld [vmem:[%s3182_s7 + $0x50] sm:$0xff]  }
 0x105   :  { %v339_v19 = vmax.f32 %v273_v14, 0.0  ;;  %v276_v20 = vadd.f32 %v2769_v3, %v275_v18  ;;  %v2476_v15 = vld [vmem:[%s3182_s7 + $0x10] sm:$0xff]   ;;  %2124 = vmatprep.subr.bf16.mxu1 %v2475_v9  ;;  %v2477_v18 = vld [vmem:[%s3182_s7 + $0x58] sm:$0xff]  }
 0x106   :  { %v342_v21 = vmax.f32 %v284_v17, 0.0  ;;  %2125 = vmatpush3.bf16.msra.mxu1 %v2476_v15 }
 0x107   :  { %v340_v22 = vmax.f32 %v276_v20, 0.0  ;;  %2126 = vmatprep.subr.bf16.mxu1 %v2477_v18 }
 0x108   :  { %v362_v23 = vpack.c.bf16 %v342_v21, %v341_v16 }
 0x109   :  { %v361_v24 = vpack.c.bf16 %v340_v22, %v339_v19  ;;  %v2304_v25 = vpop.f32.mrb[24].mxu0 }
 0x10a   :  { %v297_v26 = vadd.f32 %v2304_v25, %v2769_v3  ;;  %v288_v27 = vpop.f32.mrb[25].mxu0  ;;  %v2478_v25 = vld [vmem:[%s3182_s7 + $0x18] sm:$0xff]  }
 0x10b   :  { %2338 = vmatprep.mubr.msk.bf16.mxu1 %vm406_vm1, %v361_v24  ;;  %v289_v28 = vadd.f32 %v2769_v3, %v288_v27  ;;  %v2305_v29 = vpop.f32.mrb[26].mxu0  ;;  %v2479_v27 = vld [vmem:[%s3182_s7 + $0x60] sm:$0xff]   ;;  %2127 = vmatpush3.bf16.msra.mxu1 %v2478_v25 }
 0x10c   :  { %2339 = vmatmul.mubr.msk.bf16.gmra.mrb[20].mxu1 %vm406_vm1, %v362_v23  ;;  %v345_v30 = vmax.f32 %v297_v26, 0.0  ;;  %v300_v31 = vadd.f32 %v2305_v29, %v2769_v3  ;;  %v291_v32 = vpop.f32.mrb[27].mxu0  ;;  %2128 = vmatprep.subr.bf16.mxu1 %v2479_v27 }
 0x10d   :  { %v343_v33 = vmax.f32 %v289_v28, 0.0  ;;  %v292_v34 = vadd.f32 %v2769_v3, %v291_v32 }
 0x10e   :  { %v346_v35 = vmax.f32 %v300_v31, 0.0 }
 0x10f   :  { %v344_v36 = vmax.f32 %v292_v34, 0.0 }
 0x110   :  { %v364_v37 = vpack.c.bf16 %v346_v35, %v345_v30 }
 0x111   :  { %v363_v38 = vpack.c.bf16 %v344_v36, %v343_v33  ;;  %v2308_v39 = vpop.f32.mrb[28].mxu0  ;;  %v2480_v33 = vld [vmem:[%s3182_s7 + $0x20] sm:$0xff]   ;;  %v2481_v36 = vld [vmem:[%s3182_s7 + $0x68] sm:$0xff]  }
 0x112   :  { %v313_v40 = vadd.f32 %v2308_v39, %v2769_v3  ;;  %v304_v41 = vpop.f32.mrb[29].mxu0  ;;  %2129 = vmatpush3.bf16.msra.mxu1 %v2480_v33 }
 0x113   :  { %2342 = vmatprep.mubr.msk.bf16.mxu1 %vm406_vm1, %v363_v38  ;;  %v305_v42 = vadd.f32 %v2769_v3, %v304_v41  ;;  %v2309_v43 = vpop.f32.mrb[30].mxu0  ;;  %2130 = vmatprep.subr.bf16.mxu1 %v2481_v36 }
 0x114   :  { %2343 = vmatmul.mubr.msk.bf16.gmra.mrb[24].mxu1 %vm406_vm1, %v364_v37  ;;  %v349_v44 = vmax.f32 %v313_v40, 0.0  ;;  %v316_v45 = vadd.f32 %v2309_v43, %v2769_v3  ;;  %v307_v46 = vpop.f32.mrb[31].mxu0  ;;  %v2482_v43 = vld [vmem:[%s3182_s7 + $0x28] sm:$0xff]  }
 0x115   :  { %v347_v47 = vmax.f32 %v305_v42, 0.0  ;;  %v308_v48 = vadd.f32 %v2769_v3, %v307_v46  ;;  %v2829_v3 = vld [vmem:[%s3179_s4] ss:$0 sm:$0xff] }
 0x116   :  { %v350_v49 = vmax.f32 %v316_v45, 0.0  ;;  %v2483_v45 = vld [vmem:[%s3182_s7 + $0x70] sm:$0xff]   ;;  %2131 = vmatpush3.bf16.msra.mxu1 %v2482_v43 }
 0x117   :  { %v348_v50 = vmax.f32 %v308_v48, 0.0  ;;  %2132 = vmatprep.subr.bf16.mxu1 %v2483_v45 }
 0x118   :  { %v366_v51 = vpack.c.bf16 %v350_v49, %v349_v44 }
 0x119   :  { %v365_v52 = vpack.c.bf16 %v348_v50, %v347_v47 }
 0x11b   :  { %2346 = vmatprep.mubr.msk.bf16.mxu1 %vm406_vm1, %v365_v52 }
 0x11c   :  { %2347 = vmatmul.mubr.msk.bf16.gmra.mrb[28].mxu1 %vm406_vm1, %v366_v51  ;;  %v2484_v51 = vld [vmem:[%s3182_s7 + $0x30] sm:$0xff]  }
 0x11d   :  { %2133 = vmatpush3.bf16.msra.mxu1 %v2484_v51 }
 0x1b7   :  { %v2320_v56 = vpop.f32.mrb[0].mxu1 }
 0x1b8   :  { %v498_v57 = vadd.f32 %v2320_v56, %v2829_v3  ;;  %v489_v58 = vpop.f32.mrb[1].mxu1 }
 0x1b9   :  { %v490_v59 = vadd.f32 %v2829_v3, %v489_v58  ;;  %v2321_v60 = vpop.f32.mrb[2].mxu1 }
 0x1ba   :  { %v501_v0 = vadd.f32 %v2321_v60, %v2829_v3  ;;  %v492_v1 = vpop.f32.mrb[3].mxu1  ;;  %v618_v4 = vmax.f32 %v498_v57, 0.0 }
 0x1bb   :  { %v493_v2 = vadd.f32 %v2829_v3, %v492_v1  ;;  %v616_v7 = vmax.f32 %v490_v59, 0.0 }
 0x1bc   :  { %v619_v5 = vmax.f32 %v501_v0, 0.0 }
 0x1bd   :  { %v617_v8 = vmax.f32 %v493_v2, 0.0 }
 0x1be   :  { %v649_v10 = vpack.c.bf16 %v619_v5, %v618_v4 }
 0x1bf   :  { %v648_v11 = vpack.c.bf16 %v617_v8, %v616_v7  ;;  %v2324_v12 = vpop.f32.mrb[4].mxu1 }
 0x1c0   :  { %v514_v13 = vadd.f32 %v2324_v12, %v2829_v3  ;;  %v505_v14 = vpop.f32.mrb[5].mxu1 }
 0x1c1   :  { %v506_v16 = vadd.f32 %v2829_v3, %v505_v14  ;;  %805 = vmatmul.mubr.bf16.vlgmr.msra.gmra.mrb[32].mxu0 %v648_v11  ;;  %v2325_v17 = vpop.f32.mrb[6].mxu1 }
 0x1c2   :  { %v622_v19 = vmax.f32 %v514_v13, 0.0  ;;  %v517_v20 = vadd.f32 %v2325_v17, %v2829_v3  ;;  %v508_v21 = vpop.f32.mrb[7].mxu1  ;;  %814 = vmatprep.mubr.bf16.mxu0 %v2523_v55 }
 0x1c3   :  { %v620_v22 = vmax.f32 %v506_v16, 0.0  ;;  %v509_v23 = vadd.f32 %v2829_v3, %v508_v21 }
 0x1c4   :  { %v623_v24 = vmax.f32 %v517_v20, 0.0 }
 0x1c5   :  { %v621_v26 = vmax.f32 %v509_v23, 0.0 }
 0x1c6   :  { %v651_v28 = vpack.c.bf16 %v623_v24, %v622_v19 }
 0x1c7   :  { %v650_v29 = vpack.c.bf16 %v621_v26, %v620_v22  ;;  %v2328_v30 = vpop.f32.mrb[8].mxu1 }
 0x1c8   :  { %v530_v31 = vadd.f32 %v2328_v30, %v2829_v3  ;;  %v521_v32 = vpop.f32.mrb[9].mxu1 }
 0x1c9   :  { %815 = vmatmul.mubr.bf16.gmra.mrb[36].mxu0 %v649_v10  ;;  %v522_v34 = vadd.f32 %v2829_v3, %v521_v32  ;;  %v2329_v35 = vpop.f32.mrb[10].mxu1 }
 0x1ca   :  { %v626_v37 = vmax.f32 %v530_v31, 0.0  ;;  %824 = vmatprep.mubr.bf16.mxu0 %v2523_v55  ;;  %v533_v38 = vadd.f32 %v2329_v35, %v2829_v3  ;;  %v524_v39 = vpop.f32.mrb[11].mxu1 }
 0x1cb   :  { %v624_v40 = vmax.f32 %v522_v34, 0.0  ;;  %v525_v41 = vadd.f32 %v2829_v3, %v524_v39 }
 0x1cc   :  { %v627_v42 = vmax.f32 %v533_v38, 0.0 }
 0x1cd   :  { %v625_v44 = vmax.f32 %v525_v41, 0.0 }
 0x1ce   :  { %v653_v46 = vpack.c.bf16 %v627_v42, %v626_v37 }
 0x1cf   :  { %v652_v47 = vpack.c.bf16 %v625_v44, %v624_v40  ;;  %v2332_v48 = vpop.f32.mrb[12].mxu1 }
 0x1d0   :  { %v546_v49 = vadd.f32 %v2332_v48, %v2829_v3  ;;  %v537_v50 = vpop.f32.mrb[13].mxu1 }
 0x1d1   :  { %825 = vmatmul.mubr.bf16.gmra.mrb[40].mxu0 %v650_v29  ;;  %v538_v52 = vadd.f32 %v2829_v3, %v537_v50  ;;  %v2333_v53 = vpop.f32.mrb[14].mxu1 }
 0x1d2   :  { %834 = vmatprep.mubr.bf16.mxu0 %v2523_v55  ;;  %v630_v54 = vmax.f32 %v546_v49, 0.0  ;;  %v549_v56 = vadd.f32 %v2333_v53, %v2829_v3  ;;  %v540_v57 = vpop.f32.mrb[15].mxu1 }
 0x1d3   :  { %v628_v58 = vmax.f32 %v538_v52, 0.0  ;;  %v541_v59 = vadd.f32 %v2829_v3, %v540_v57 }
 0x1d4   :  { %v631_v60 = vmax.f32 %v549_v56, 0.0 }
 0x1d5   :  { %v629_v61 = vmax.f32 %v541_v59, 0.0  ;;  %v682_v59 = vlaneseq }
 0x1d6   :  { %v2892_v62 = vpack.c.bf16 %v631_v60, %v630_v54 }
 0x1d7   :  { %v654_v63 = vpack.c.bf16 %v629_v61, %v628_v58  ;;  %v2336_v0 = vpop.f32.mrb[16].mxu1  ;;  %v2486_v58 = vld [vmem:[%s3182_s7 + $0x38] sm:$0xff]   ;;  %v683_v60 = vshrl.u32 %v682_v59, 7 }
 0x1d8   :  { %v562_v1 = vadd.f32 %v2336_v0, %v2829_v3  ;;  %v553_v2 = vpop.f32.mrb[17].mxu1 }
 0x1d9   :  { %835 = vmatmul.mubr.bf16.gmra.mrb[44].mxu0 %v651_v28  ;;  %v554_v4 = vadd.f32 %v2829_v3, %v553_v2  ;;  %v2337_v5 = vpop.f32.mrb[18].mxu1  ;;  %v684_v61 = vsub.s32 0, %v683_v60 }
 0x1da   :  { %844 = vmatprep.mubr.bf16.mxu0 %v2523_v55  ;;  %v634_v6 = vmax.f32 %v562_v1, 0.0  ;;  %v565_v7 = vadd.f32 %v2337_v5, %v2829_v3  ;;  %v556_v8 = vpop.f32.mrb[19].mxu1 }
 0x1db   :  { %v632_v9 = vmax.f32 %v554_v4, 0.0  ;;  %v557_v10 = vadd.f32 %v2829_v3, %v556_v8 }
 0x1dc   :  { %v635_v11 = vmax.f32 %v565_v7, 0.0 }
 0x1dd   :  { %v633_v12 = vmax.f32 %v557_v10, 0.0  ;;  %v2488_v10 = vld [vmem:[%s3184_s9 + $0x8] sm:$0xff]  }
 0x1de   :  { %v657_v13 = vpack.c.bf16 %v635_v11, %v634_v6 }
 0x1df   :  { %v656_v14 = vpack.c.bf16 %v633_v12, %v632_v9  ;;  %v2340_v15 = vpop.f32.mrb[20].mxu1  ;;  %v2487_v9 = vld [vmem:[%s3184_s9] sm:$0xff]  }
 0x1e0   :  { %v578_v16 = vadd.f32 %v2340_v15, %v2829_v3  ;;  %v569_v17 = vpop.f32.mrb[21].mxu1  ;;  %2350 = vmatprep.subr.bf16.mxu0 %v2487_v9 }
 0x1e1   :  { %845 = vmatmul.mubr.bf16.gmra.mrb[48].mxu0 %v652_v47  ;;  %v570_v18 = vadd.f32 %v2829_v3, %v569_v17  ;;  %v2341_v19 = vpop.f32.mrb[22].mxu1  ;;  %v2489_v17 = vld [vmem:[%s3184_s9 + $0x10] sm:$0xff]  }
 0x1e2   :  { %854 = vmatprep.mubr.bf16.mxu0 %v2523_v55  ;;  %v638_v20 = vmax.f32 %v578_v16, 0.0  ;;  %v581_v21 = vadd.f32 %v2341_v19, %v2829_v3  ;;  %v572_v22 = vpop.f32.mrb[23].mxu1  ;;  %2351 = vmatpush3.bf16.msra.mxu0 %v2487_v9 }
 0x1e3   :  { %v636_v23 = vmax.f32 %v570_v18, 0.0  ;;  %v573_v24 = vadd.f32 %v2829_v3, %v572_v22  ;;  %2352 = vmatprep.subr.bf16.mxu0 %v2488_v10 }
 0x1e4   :  { %v639_v25 = vmax.f32 %v581_v21, 0.0 }
 0x1e5   :  { %v637_v26 = vmax.f32 %v573_v24, 0.0 }
 0x1e6   :  { %v659_v27 = vpack.c.bf16 %v639_v25, %v638_v20  ;;  %2353 = vmatpush3.bf16.msra.mxu0 %v2488_v10 }
 0x1e7   :  { %v658_v28 = vpack.c.bf16 %v637_v26, %v636_v23  ;;  %v2344_v29 = vpop.f32.mrb[24].mxu1  ;;  %2354 = vmatprep.subr.bf16.mxu0 %v2489_v17  ;;  %v2490_v26 = vld [vmem:[%s3184_s9 + $0x18] sm:$0xff]  }
 0x1e8   :  { %v594_v30 = vadd.f32 %v2344_v29, %v2829_v3  ;;  %v585_v31 = vpop.f32.mrb[25].mxu1 }
 0x1e9   :  { %855 = vmatmul.mubr.bf16.gmra.mrb[52].mxu0 %v653_v46  ;;  %v586_v32 = vadd.f32 %v2829_v3, %v585_v31  ;;  %v2345_v33 = vpop.f32.mrb[26].mxu1 }
 0x1ea   :  { %864 = vmatprep.mubr.bf16.mxu0 %v2523_v55  ;;  %v642_v34 = vmax.f32 %v594_v30, 0.0  ;;  %v597_v35 = vadd.f32 %v2345_v33, %v2829_v3  ;;  %v588_v36 = vpop.f32.mrb[27].mxu1  ;;  %2355 = vmatpush3.bf16.msra.mxu0 %v2489_v17 }
 0x1eb   :  { %v640_v37 = vmax.f32 %v586_v32, 0.0  ;;  %v589_v38 = vadd.f32 %v2829_v3, %v588_v36  ;;  %2356 = vmatprep.subr.bf16.mxu0 %v2490_v26 }
 0x1ec   :  { %v643_v39 = vmax.f32 %v597_v35, 0.0 }
 0x1ed   :  { %v641_v40 = vmax.f32 %v589_v38, 0.0 }
 0x1ee   :  { %v661_v41 = vpack.c.bf16 %v643_v39, %v642_v34  ;;  %2357 = vmatpush3.bf16.msra.mxu0 %v2490_v26 }
 0x1ef   :  { %v660_v42 = vpack.c.bf16 %v641_v40, %v640_v37  ;;  %v2348_v43 = vpop.f32.mrb[28].mxu1 }
 0x1f0   :  { %v610_v44 = vadd.f32 %v2348_v43, %v2829_v3  ;;  %v601_v45 = vpop.f32.mrb[29].mxu1 }
 0x1f1   :  { %865 = vmatmul.mubr.bf16.gmra.mrb[56].mxu0 %v654_v63  ;;  %v602_v46 = vadd.f32 %v2829_v3, %v601_v45  ;;  %v2349_v47 = vpop.f32.mrb[30].mxu1  ;;  %v688_v63 = vsub.s32 1, %v683_v60 }
 0x1f2   :  { %874 = vmatprep.mubr.bf16.mxu0 %v2523_v55  ;;  %v646_v48 = vmax.f32 %v610_v44, 0.0  ;;  %v613_v49 = vadd.f32 %v2349_v47, %v2829_v3  ;;  %v604_v50 = vpop.f32.mrb[31].mxu1 }
 0x1f3   :  { %v644_v51 = vmax.f32 %v602_v46, 0.0  ;;  %v605_v52 = vadd.f32 %v2829_v3, %v604_v50  ;;  %v2485_v3 = vld [vmem:[%s3182_s7 + $0x78] sm:$0xff]  }
 0x1f4   :  { %v647_v53 = vmax.f32 %v613_v49, 0.0  ;;  %2134 = vmatprep.subr.bf16.mxu1 %v2485_v3 }
 0x1f5   :  { %v645_v54 = vmax.f32 %v605_v52, 0.0  ;;  %2135 = vmatpush3.bf16.msra.mxu1 %v2486_v58 }
 0x1f6   :  { %v663_v56 = vpack.c.bf16 %v647_v53, %v646_v48 }
 0x1f7   :  { %v662_v57 = vpack.c.bf16 %v645_v54, %v644_v51 }
 0x1f9   :  { %875 = vmatmul.mubr.bf16.gmra.mrb[60].mxu0 %v2892_v62  ;;  %v680_v62 = vld [vmem:[%s3181_s6] sm:$0x3] }
 0x1fa   :  { %884 = vmatprep.mubr.bf16.mxu0 %v2523_v55  ;;  %v2932_v0 = vrot.slane %v680_v62, %v684_v61  ;;  %v2934_v1 = vrot.slane %v680_v62, %v688_v63 }
 0x201   :  { %885 = vmatmul.mubr.bf16.gmra.mrb[64].mxu0 %v656_v14 }
 0x202   :  { %894 = vmatprep.mubr.bf16.mxu0 %v2523_v55 }
 0x209   :  { %895 = vmatmul.mubr.bf16.gmra.mrb[68].mxu0 %v657_v13 }
 0x20a   :  { %904 = vmatprep.mubr.bf16.mxu0 %v2523_v55 }
 0x211   :  { %905 = vmatmul.mubr.bf16.gmra.mrb[72].mxu0 %v658_v28 }
 0x212   :  { %914 = vmatprep.mubr.bf16.mxu0 %v2523_v55 }
 0x219   :  { %915 = vmatmul.mubr.bf16.gmra.mrb[76].mxu0 %v659_v27 }
 0x21a   :  { %924 = vmatprep.mubr.bf16.mxu0 %v2523_v55 }
 0x221   :  { %925 = vmatmul.mubr.bf16.gmra.mrb[80].mxu0 %v660_v42 }
 0x222   :  { %934 = vmatprep.mubr.bf16.mxu0 %v2523_v55 }
 0x229   :  { %935 = vmatmul.mubr.bf16.gmra.mrb[84].mxu0 %v661_v41 }
 0x22a   :  { %944 = vmatprep.mubr.bf16.mxu0 %v2523_v55 }
 0x231   :  { %945 = vmatmul.mubr.bf16.gmra.mrb[88].mxu0 %v662_v57 }
 0x232   :  { %954 = vmatprep.mubr.bf16.mxu0 %v2523_v55 }
 0x239   :  { %955 = vmatmul.mubr.bf16.gmra.mrb[92].mxu0 %v663_v56 }
 0x294   :  { %v806_v2 = vpop.f32.mrb[32].mxu0 }
 0x295   :  { %v807_v4 = vadd.f32 %v806_v2, %v2932_v0  ;;  %v808_v5 = vpop.f32.mrb[33].mxu0 }
 0x296   :  { %v809_v6 = vadd.f32 %v808_v5, %v2934_v1  ;;  %v810_v55 = vpop.f32.mrb[34].mxu0 }
 0x297   :  { %v811_v7 = vadd.f32 %v810_v55, %v2932_v0  ;;  %v812_v8 = vpop.f32.mrb[35].mxu0  ;;  %v965_v12 = vmax.f32 %v807_v4, 0.0 }
 0x298   :  { %v813_v11 = vadd.f32 %v812_v8, %v2934_v1  ;;  %v966_v14 = vmax.f32 %v809_v6, 0.0 }
 0x299   :  { %v967_v13 = vmax.f32 %v811_v7, 0.0 }
 0x29a   :  { %v968_v15 = vmax.f32 %v813_v11, 0.0 }
 0x29b   :  { %v1029_v16 = vpack.c.bf16 %v967_v13, %v965_v12 }
 0x29c   :  { %v1030_v18 = vpack.c.bf16 %v968_v15, %v966_v14  ;;  %v816_v19 = vpop.f32.mrb[36].mxu0 }
 0x29d   :  { %v817_v20 = vadd.f32 %v816_v19, %v2932_v0  ;;  %v818_v21 = vpop.f32.mrb[37].mxu0 }
 0x29e   :  { %v819_v22 = vadd.f32 %v818_v21, %v2934_v1  ;;  %v820_v23 = vpop.f32.mrb[38].mxu0  ;;  %1228 = vmatprep.mubr.bf16.mxu1 %v1030_v18 }
 0x29f   :  { %v821_v24 = vadd.f32 %v820_v23, %v2932_v0  ;;  %v822_v25 = vpop.f32.mrb[39].mxu0  ;;  %1229 = vmatmul.mubr.bf16.vlgmr.msra.gmra.mrb[32].mxu1 %v1029_v16  ;;  %v969_v28 = vmax.f32 %v817_v20, 0.0 }
 0x2a0   :  { %v823_v27 = vadd.f32 %v822_v25, %v2934_v1  ;;  %v970_v30 = vmax.f32 %v819_v22, 0.0 }
 0x2a1   :  { %v971_v29 = vmax.f32 %v821_v24, 0.0 }
 0x2a2   :  { %v972_v31 = vmax.f32 %v823_v27, 0.0 }
 0x2a3   :  { %v1031_v32 = vpack.c.bf16 %v971_v29, %v969_v28 }
 0x2a4   :  { %v1032_v33 = vpack.c.bf16 %v972_v31, %v970_v30  ;;  %v826_v34 = vpop.f32.mrb[40].mxu0 }
 0x2a5   :  { %v827_v35 = vadd.f32 %v826_v34, %v2932_v0  ;;  %v828_v36 = vpop.f32.mrb[41].mxu0 }
 0x2a6   :  { %v829_v37 = vadd.f32 %v828_v36, %v2934_v1  ;;  %v830_v38 = vpop.f32.mrb[42].mxu0  ;;  %1236 = vmatprep.mubr.bf16.mxu1 %v1032_v33 }
 0x2a7   :  { %v831_v39 = vadd.f32 %v830_v38, %v2932_v0  ;;  %v832_v40 = vpop.f32.mrb[43].mxu0  ;;  %1237 = vmatmul.mubr.bf16.gmra.mrb[36].mxu1 %v1031_v32  ;;  %v973_v42 = vmax.f32 %v827_v35, 0.0 }
 0x2a8   :  { %v833_v41 = vadd.f32 %v832_v40, %v2934_v1  ;;  %v974_v44 = vmax.f32 %v829_v37, 0.0 }
 0x2a9   :  { %v975_v43 = vmax.f32 %v831_v39, 0.0 }
 0x2aa   :  { %v976_v45 = vmax.f32 %v833_v41, 0.0 }
 0x2ab   :  { %v1033_v46 = vpack.c.bf16 %v975_v43, %v973_v42 }
 0x2ac   :  { %v1034_v47 = vpack.c.bf16 %v976_v45, %v974_v44  ;;  %v836_v48 = vpop.f32.mrb[44].mxu0 }
 0x2ad   :  { %v837_v49 = vadd.f32 %v836_v48, %v2932_v0  ;;  %v838_v50 = vpop.f32.mrb[45].mxu0 }
 0x2ae   :  { %v839_v51 = vadd.f32 %v838_v50, %v2934_v1  ;;  %v840_v52 = vpop.f32.mrb[46].mxu0  ;;  %1244 = vmatprep.mubr.bf16.mxu1 %v1034_v47 }
 0x2af   :  { %v841_v53 = vadd.f32 %v840_v52, %v2932_v0  ;;  %v842_v54 = vpop.f32.mrb[47].mxu0  ;;  %1245 = vmatmul.mubr.bf16.gmra.mrb[40].mxu1 %v1033_v46  ;;  %v977_v57 = vmax.f32 %v837_v49, 0.0 }
 0x2b0   :  { %v843_v56 = vadd.f32 %v842_v54, %v2934_v1  ;;  %v978_v58 = vmax.f32 %v839_v51, 0.0 }
 0x2b1   :  { %v979_v3 = vmax.f32 %v841_v53, 0.0 }
 0x2b2   :  { %v980_v59 = vmax.f32 %v843_v56, 0.0 }
 0x2b3   :  { %v1035_v60 = vpack.c.bf16 %v979_v3, %v977_v57 }
 0x2b4   :  { %v1036_v61 = vpack.c.bf16 %v980_v59, %v978_v58  ;;  %v846_v62 = vpop.f32.mrb[48].mxu0 }
 0x2b5   :  { %v847_v63 = vadd.f32 %v846_v62, %v2932_v0  ;;  %v848_v2 = vpop.f32.mrb[49].mxu0 }
 0x2b6   :  { %v849_v4 = vadd.f32 %v848_v2, %v2934_v1  ;;  %v850_v5 = vpop.f32.mrb[50].mxu0  ;;  %1252 = vmatprep.mubr.bf16.mxu1 %v1036_v61 }
 0x2b7   :  { %v851_v6 = vadd.f32 %v850_v5, %v2932_v0  ;;  %v852_v55 = vpop.f32.mrb[51].mxu0  ;;  %1253 = vmatmul.mubr.bf16.gmra.mrb[44].mxu1 %v1035_v60  ;;  %v981_v8 = vmax.f32 %v847_v63, 0.0 }
 0x2b8   :  { %v853_v7 = vadd.f32 %v852_v55, %v2934_v1  ;;  %v982_v10 = vmax.f32 %v849_v4, 0.0 }
 0x2b9   :  { %v983_v9 = vmax.f32 %v851_v6, 0.0 }
 0x2ba   :  { %v984_v11 = vmax.f32 %v853_v7, 0.0 }
 0x2bb   :  { %v1037_v12 = vpack.c.bf16 %v983_v9, %v981_v8 }
 0x2bc   :  { %v1038_v13 = vpack.c.bf16 %v984_v11, %v982_v10  ;;  %v856_v14 = vpop.f32.mrb[52].mxu0 }
 0x2bd   :  { %v857_v15 = vadd.f32 %v856_v14, %v2932_v0  ;;  %v858_v16 = vpop.f32.mrb[53].mxu0 }
 0x2be   :  { %v859_v17 = vadd.f32 %v858_v16, %v2934_v1  ;;  %v860_v18 = vpop.f32.mrb[54].mxu0  ;;  %1260 = vmatprep.mubr.bf16.mxu1 %v1038_v13 }
 0x2bf   :  { %v861_v19 = vadd.f32 %v860_v18, %v2932_v0  ;;  %v862_v20 = vpop.f32.mrb[55].mxu0  ;;  %1261 = vmatmul.mubr.bf16.gmra.mrb[48].mxu1 %v1037_v12  ;;  %v985_v22 = vmax.f32 %v857_v15, 0.0 }
 0x2c0   :  { %v863_v21 = vadd.f32 %v862_v20, %v2934_v1  ;;  %v986_v24 = vmax.f32 %v859_v17, 0.0 }
 0x2c1   :  { %v987_v23 = vmax.f32 %v861_v19, 0.0 }
 0x2c2   :  { %v988_v25 = vmax.f32 %v863_v21, 0.0 }
 0x2c3   :  { %v1039_v26 = vpack.c.bf16 %v987_v23, %v985_v22 }
 0x2c4   :  { %v1040_v27 = vpack.c.bf16 %v988_v25, %v986_v24  ;;  %v866_v28 = vpop.f32.mrb[56].mxu0 }
 0x2c5   :  { %v867_v29 = vadd.f32 %v866_v28, %v2932_v0  ;;  %v868_v30 = vpop.f32.mrb[57].mxu0 }
 0x2c6   :  { %v869_v31 = vadd.f32 %v868_v30, %v2934_v1  ;;  %v870_v32 = vpop.f32.mrb[58].mxu0  ;;  %1268 = vmatprep.mubr.bf16.mxu1 %v1040_v27 }
 0x2c7   :  { %v871_v33 = vadd.f32 %v870_v32, %v2932_v0  ;;  %v872_v34 = vpop.f32.mrb[59].mxu0  ;;  %1269 = vmatmul.mubr.bf16.gmra.mrb[52].mxu1 %v1039_v26  ;;  %v989_v36 = vmax.f32 %v867_v29, 0.0 }
 0x2c8   :  { %v873_v35 = vadd.f32 %v872_v34, %v2934_v1  ;;  %v990_v38 = vmax.f32 %v869_v31, 0.0 }
 0x2c9   :  { %v991_v37 = vmax.f32 %v871_v33, 0.0 }
 0x2ca   :  { %v992_v39 = vmax.f32 %v873_v35, 0.0 }
 0x2cb   :  { %v1041_v40 = vpack.c.bf16 %v991_v37, %v989_v36 }
 0x2cc   :  { %v1042_v41 = vpack.c.bf16 %v992_v39, %v990_v38  ;;  %v876_v42 = vpop.f32.mrb[60].mxu0 }
 0x2cd   :  { %v877_v43 = vadd.f32 %v876_v42, %v2932_v0  ;;  %v878_v44 = vpop.f32.mrb[61].mxu0 }
 0x2ce   :  { %v879_v45 = vadd.f32 %v878_v44, %v2934_v1  ;;  %v880_v46 = vpop.f32.mrb[62].mxu0  ;;  %1276 = vmatprep.mubr.bf16.mxu1 %v1042_v41 }
 0x2cf   :  { %v881_v47 = vadd.f32 %v880_v46, %v2932_v0  ;;  %v882_v48 = vpop.f32.mrb[63].mxu0  ;;  %1277 = vmatmul.mubr.bf16.gmra.mrb[56].mxu1 %v1041_v40  ;;  %v993_v50 = vmax.f32 %v877_v43, 0.0 }
 0x2d0   :  { %v883_v49 = vadd.f32 %v882_v48, %v2934_v1  ;;  %v994_v52 = vmax.f32 %v879_v45, 0.0 }
 0x2d1   :  { %v995_v51 = vmax.f32 %v881_v47, 0.0 }
 0x2d2   :  { %v996_v53 = vmax.f32 %v883_v49, 0.0 }
 0x2d3   :  { %v1043_v54 = vpack.c.bf16 %v995_v51, %v993_v50  ;;  %v2491_v51 = vld [vmem:[%s3184_s9 + $0x20] sm:$0xff]  }
 0x2d4   :  { %v1044_v56 = vpack.c.bf16 %v996_v53, %v994_v52  ;;  %v886_v57 = vpop.f32.mrb[64].mxu0  ;;  %2358 = vmatprep.subr.bf16.mxu0 %v2491_v51 }
 0x2d5   :  { %v887_v3 = vadd.f32 %v886_v57, %v2932_v0  ;;  %v888_v58 = vpop.f32.mrb[65].mxu0  ;;  %2359 = vmatpush3.bf16.msra.mxu0 %v2491_v51 }
 0x2d6   :  { %v889_v59 = vadd.f32 %v888_v58, %v2934_v1  ;;  %v890_v60 = vpop.f32.mrb[66].mxu0  ;;  %1284 = vmatprep.mubr.bf16.mxu1 %v1044_v56 }
 0x2d7   :  { %v891_v61 = vadd.f32 %v890_v60, %v2932_v0  ;;  %v892_v62 = vpop.f32.mrb[67].mxu0  ;;  %1285 = vmatmul.mubr.bf16.gmra.mrb[60].mxu1 %v1043_v54  ;;  %v997_v2 = vmax.f32 %v887_v3, 0.0 }
 0x2d8   :  { %v893_v63 = vadd.f32 %v892_v62, %v2934_v1  ;;  %v998_v5 = vmax.f32 %v889_v59, 0.0  ;;  %v2492_v59 = vld [vmem:[%s3184_s9 + $0x28] sm:$0xff]  }
 0x2d9   :  { %v999_v4 = vmax.f32 %v891_v61, 0.0  ;;  %2360 = vmatprep.subr.bf16.mxu0 %v2492_v59 }
 0x2da   :  { %v1000_v6 = vmax.f32 %v893_v63, 0.0  ;;  %2361 = vmatpush3.bf16.msra.mxu0 %v2492_v59 }
 0x2db   :  { %v1045_v55 = vpack.c.bf16 %v999_v4, %v997_v2 }
 0x2dc   :  { %v1046_v7 = vpack.c.bf16 %v1000_v6, %v998_v5  ;;  %v896_v8 = vpop.f32.mrb[68].mxu0  ;;  %v2493_v6 = vld [vmem:[%s3184_s9 + $0x30] sm:$0xff]  }
 0x2dd   :  { %v897_v9 = vadd.f32 %v896_v8, %v2932_v0  ;;  %v898_v10 = vpop.f32.mrb[69].mxu0  ;;  %2362 = vmatprep.subr.bf16.mxu0 %v2493_v6 }
 0x2de   :  { %v899_v11 = vadd.f32 %v898_v10, %v2934_v1  ;;  %v900_v12 = vpop.f32.mrb[70].mxu0  ;;  %1292 = vmatprep.mubr.bf16.mxu1 %v1046_v7  ;;  %2363 = vmatpush3.bf16.msra.mxu0 %v2493_v6 }
 0x2df   :  { %v901_v13 = vadd.f32 %v900_v12, %v2932_v0  ;;  %v902_v14 = vpop.f32.mrb[71].mxu0  ;;  %1293 = vmatmul.mubr.bf16.gmra.mrb[64].mxu1 %v1045_v55  ;;  %v1001_v16 = vmax.f32 %v897_v9, 0.0 }
 0x2e0   :  { %v903_v15 = vadd.f32 %v902_v14, %v2934_v1  ;;  %v1002_v18 = vmax.f32 %v899_v11, 0.0 }
 0x2e1   :  { %v1003_v17 = vmax.f32 %v901_v13, 0.0  ;;  %v2494_v13 = vld [vmem:[%s3184_s9 + $0x38] sm:$0xff]  }
 0x2e2   :  { %v1004_v19 = vmax.f32 %v903_v15, 0.0  ;;  %2364 = vmatprep.subr.bf16.mxu0 %v2494_v13 }
 0x2e3   :  { %v1047_v20 = vpack.c.bf16 %v1003_v17, %v1001_v16  ;;  %2365 = vmatpush3.bf16.msra.mxu0 %v2494_v13 }
 0x2e4   :  { %v1048_v21 = vpack.c.bf16 %v1004_v19, %v1002_v18  ;;  %v906_v22 = vpop.f32.mrb[72].mxu0 }
 0x2e5   :  { %v907_v23 = vadd.f32 %v906_v22, %v2932_v0  ;;  %v908_v24 = vpop.f32.mrb[73].mxu0 }
 0x2e6   :  { %v909_v25 = vadd.f32 %v908_v24, %v2934_v1  ;;  %v910_v26 = vpop.f32.mrb[74].mxu0  ;;  %1300 = vmatprep.mubr.bf16.mxu1 %v1048_v21 }
 0x2e7   :  { %v911_v27 = vadd.f32 %v910_v26, %v2932_v0  ;;  %v912_v28 = vpop.f32.mrb[75].mxu0  ;;  %1301 = vmatmul.mubr.bf16.gmra.mrb[68].mxu1 %v1047_v20  ;;  %v1005_v30 = vmax.f32 %v907_v23, 0.0 }
 0x2e8   :  { %v913_v29 = vadd.f32 %v912_v28, %v2934_v1  ;;  %v1006_v32 = vmax.f32 %v909_v25, 0.0 }
 0x2e9   :  { %v1007_v31 = vmax.f32 %v911_v27, 0.0 }
 0x2ea   :  { %v1008_v33 = vmax.f32 %v913_v29, 0.0 }
 0x2eb   :  { %v1049_v34 = vpack.c.bf16 %v1007_v31, %v1005_v30 }
 0x2ec   :  { %v1050_v35 = vpack.c.bf16 %v1008_v33, %v1006_v32  ;;  %v916_v36 = vpop.f32.mrb[76].mxu0 }
 0x2ed   :  { %v917_v37 = vadd.f32 %v916_v36, %v2932_v0  ;;  %v918_v38 = vpop.f32.mrb[77].mxu0 }
 0x2ee   :  { %v919_v39 = vadd.f32 %v918_v38, %v2934_v1  ;;  %v920_v40 = vpop.f32.mrb[78].mxu0  ;;  %1308 = vmatprep.mubr.bf16.mxu1 %v1050_v35 }
 0x2ef   :  { %v921_v41 = vadd.f32 %v920_v40, %v2932_v0  ;;  %v922_v42 = vpop.f32.mrb[79].mxu0  ;;  %1309 = vmatmul.mubr.bf16.gmra.mrb[72].mxu1 %v1049_v34  ;;  %v1009_v44 = vmax.f32 %v917_v37, 0.0 }
 0x2f0   :  { %v923_v43 = vadd.f32 %v922_v42, %v2934_v1  ;;  %v1010_v46 = vmax.f32 %v919_v39, 0.0 }
 0x2f1   :  { %v1011_v45 = vmax.f32 %v921_v41, 0.0 }
 0x2f2   :  { %v1012_v47 = vmax.f32 %v923_v43, 0.0 }
 0x2f3   :  { %v1051_v48 = vpack.c.bf16 %v1011_v45, %v1009_v44 }
 0x2f4   :  { %v1052_v49 = vpack.c.bf16 %v1012_v47, %v1010_v46  ;;  %v926_v50 = vpop.f32.mrb[80].mxu0 }
 0x2f5   :  { %v927_v52 = vadd.f32 %v926_v50, %v2932_v0  ;;  %v928_v53 = vpop.f32.mrb[81].mxu0 }
 0x2f6   :  { %v929_v54 = vadd.f32 %v928_v53, %v2934_v1  ;;  %v930_v56 = vpop.f32.mrb[82].mxu0  ;;  %1316 = vmatprep.mubr.bf16.mxu1 %v1052_v49  ;;  %v3027_v49 = vld [vmem:[%s3183_s8] ss:$0 sm:$0xff] }
 0x2f7   :  { %v931_v57 = vadd.f32 %v930_v56, %v2932_v0  ;;  %v932_v3 = vpop.f32.mrb[83].mxu0  ;;  %1317 = vmatmul.mubr.bf16.gmra.mrb[76].mxu1 %v1051_v48  ;;  %v1013_v60 = vmax.f32 %v927_v52, 0.0  ;;  %v2496_v56 = vld [vmem:[%s3186_s11 + $0x8] sm:$0xff]  }
 0x2f8   :  { %v933_v58 = vadd.f32 %v932_v3, %v2934_v1  ;;  %v1014_v62 = vmax.f32 %v929_v54, 0.0  ;;  %v2495_v54 = vld [vmem:[%s3186_s11] sm:$0xff]  }
 0x2f9   :  { %v1015_v61 = vmax.f32 %v931_v57, 0.0  ;;  %2398 = vmatprep.subr.bf16.mxu1 %v2495_v54 }
 0x2fa   :  { %v1016_v63 = vmax.f32 %v933_v58, 0.0  ;;  %2399 = vmatpush3.bf16.msra.mxu1 %v2495_v54 }
 0x2fb   :  { %v1053_v2 = vpack.c.bf16 %v1015_v61, %v1013_v60  ;;  %2400 = vmatprep.subr.bf16.mxu1 %v2496_v56 }
 0x2fc   :  { %v1054_v4 = vpack.c.bf16 %v1016_v63, %v1014_v62  ;;  %v936_v5 = vpop.f32.mrb[84].mxu0 }
 0x2fd   :  { %v937_v55 = vadd.f32 %v936_v5, %v2932_v0  ;;  %v938_v7 = vpop.f32.mrb[85].mxu0 }
 0x2fe   :  { %v939_v8 = vadd.f32 %v938_v7, %v2934_v1  ;;  %v940_v9 = vpop.f32.mrb[86].mxu0  ;;  %1324 = vmatprep.mubr.bf16.mxu1 %v1054_v4  ;;  %2401 = vmatpush3.bf16.msra.mxu1 %v2496_v56 }
 0x2ff   :  { %v941_v10 = vadd.f32 %v940_v9, %v2932_v0  ;;  %v942_v11 = vpop.f32.mrb[87].mxu0  ;;  %1325 = vmatmul.mubr.bf16.gmra.mrb[80].mxu1 %v1053_v2  ;;  %v1017_v14 = vmax.f32 %v937_v55, 0.0 }
 0x300   :  { %v943_v12 = vadd.f32 %v942_v11, %v2934_v1  ;;  %v1018_v16 = vmax.f32 %v939_v8, 0.0 }
 0x301   :  { %v1019_v15 = vmax.f32 %v941_v10, 0.0 }
 0x302   :  { %v1020_v17 = vmax.f32 %v943_v12, 0.0 }
 0x303   :  { %v1055_v18 = vpack.c.bf16 %v1019_v15, %v1017_v14 }
 0x304   :  { %v1056_v19 = vpack.c.bf16 %v1020_v17, %v1018_v16  ;;  %v946_v20 = vpop.f32.mrb[88].mxu0 }
 0x305   :  { %v947_v21 = vadd.f32 %v946_v20, %v2932_v0  ;;  %v948_v22 = vpop.f32.mrb[89].mxu0 }
 0x306   :  { %v949_v23 = vadd.f32 %v948_v22, %v2934_v1  ;;  %v950_v24 = vpop.f32.mrb[90].mxu0  ;;  %1332 = vmatprep.mubr.bf16.mxu1 %v1056_v19 }
 0x307   :  { %v951_v25 = vadd.f32 %v950_v24, %v2932_v0  ;;  %v952_v26 = vpop.f32.mrb[91].mxu0  ;;  %1333 = vmatmul.mubr.bf16.gmra.mrb[84].mxu1 %v1055_v18  ;;  %v1021_v28 = vmax.f32 %v947_v21, 0.0 }
 0x308   :  { %v953_v27 = vadd.f32 %v952_v26, %v2934_v1  ;;  %v1022_v30 = vmax.f32 %v949_v23, 0.0 }
 0x309   :  { %v1023_v29 = vmax.f32 %v951_v25, 0.0 }
 0x30a   :  { %v1024_v31 = vmax.f32 %v953_v27, 0.0 }
 0x30b   :  { %v1057_v32 = vpack.c.bf16 %v1023_v29, %v1021_v28 }
 0x30c   :  { %v1058_v33 = vpack.c.bf16 %v1024_v31, %v1022_v30  ;;  %v956_v34 = vpop.f32.mrb[92].mxu0 }
 0x30d   :  { %v957_v35 = vadd.f32 %v956_v34, %v2932_v0  ;;  %v958_v36 = vpop.f32.mrb[93].mxu0 }
 0x30e   :  { %v959_v37 = vadd.f32 %v958_v36, %v2934_v1  ;;  %v960_v38 = vpop.f32.mrb[94].mxu0  ;;  %1340 = vmatprep.mubr.bf16.mxu1 %v1058_v33 }
 0x30f   :  { %v961_v39 = vadd.f32 %v960_v38, %v2932_v0  ;;  %v962_v40 = vpop.f32.mrb[95].mxu0  ;;  %1341 = vmatmul.mubr.bf16.gmra.mrb[88].mxu1 %v1057_v32  ;;  %v1025_v42 = vmax.f32 %v957_v35, 0.0 }
 0x310   :  { %v963_v41 = vadd.f32 %v962_v40, %v2934_v1  ;;  %v1026_v44 = vmax.f32 %v959_v37, 0.0 }
 0x311   :  { %v1027_v43 = vmax.f32 %v961_v39, 0.0 }
 0x312   :  { %v1028_v45 = vmax.f32 %v963_v41, 0.0 }
 0x313   :  { %v1059_v46 = vpack.c.bf16 %v1027_v43, %v1025_v42 }
 0x314   :  { %v1060_v47 = vpack.c.bf16 %v1028_v45, %v1026_v44 }
 0x316   :  { %1348 = vmatprep.mubr.bf16.mxu1 %v1060_v47 }
 0x317   :  { %1349 = vmatmul.mubr.bf16.gmra.mrb[92].mxu1 %v1059_v46 }
 0x372   :  { %v2136_v48 = vpop.f32.mrb[32].mxu1 }
 0x373   :  { %v2137_v50 = vpop.f32.mrb[33].mxu1 }
 0x374   :  { %v2138_v0 = vadd.f32 %v2137_v50, %v2136_v48  ;;  %v2139_v51 = vpop.f32.mrb[34].mxu1 }
 0x375   :  { %v2140_v52 = vpop.f32.mrb[35].mxu1 }
 0x376   :  { %v1231_v1 = vadd.f32 %v2138_v0, %v3027_v49  ;;  %v2141_v53 = vadd.f32 %v2140_v52, %v2139_v51 }
 0x378   :  { %v1234_v57 = vadd.f32 %v2141_v53, %v3027_v49  ;;  %v1357_v3 = vmax.f32 %v1231_v1, 0.0 }
 0x37a   :  { %v1358_v58 = vmax.f32 %v1234_v57, 0.0  ;;  %v2142_v59 = vpop.f32.mrb[36].mxu1 }
 0x37b   :  { %v2143_v60 = vpop.f32.mrb[37].mxu1 }
 0x37c   :  { %v2144_v61 = vadd.f32 %v2143_v60, %v2142_v59  ;;  %v2145_v62 = vpop.f32.mrb[38].mxu1  ;;  %v1389_v63 = vpack.c.bf16 %v1358_v58, %v1357_v3 }
 0x37d   :  { %v2146_v2 = vpop.f32.mrb[39].mxu1 }
 0x37e   :  { %v1239_v4 = vadd.f32 %v2144_v61, %v3027_v49  ;;  %v2147_v5 = vadd.f32 %v2146_v2, %v2145_v62  ;;  %2366 = vmatprep.mubr.bf16.mxu0 %v1389_v63 }
 0x380   :  { %v1242_v6 = vadd.f32 %v2147_v5, %v3027_v49  ;;  %v1359_v55 = vmax.f32 %v1239_v4, 0.0 }
 0x382   :  { %v1360_v7 = vmax.f32 %v1242_v6, 0.0  ;;  %v2148_v8 = vpop.f32.mrb[40].mxu1 }
 0x383   :  { %v2149_v9 = vpop.f32.mrb[41].mxu1 }
 0x384   :  { %v1390_v10 = vpack.c.bf16 %v1360_v7, %v1359_v55  ;;  %v2150_v11 = vadd.f32 %v2149_v9, %v2148_v8  ;;  %v2151_v12 = vpop.f32.mrb[42].mxu1 }
 0x385   :  { %v2152_v13 = vpop.f32.mrb[43].mxu1 }
 0x386   :  { %v1247_v14 = vadd.f32 %v2150_v11, %v3027_v49  ;;  %v2153_v15 = vadd.f32 %v2152_v13, %v2151_v12  ;;  %2367 = vmatmul.mubr.bf16.vlgmr.msra.gmra.mrb[96].mxu0 %v1390_v10 }
 0x388   :  { %v1250_v16 = vadd.f32 %v2153_v15, %v3027_v49  ;;  %v1361_v17 = vmax.f32 %v1247_v14, 0.0 }
 0x38a   :  { %v1362_v18 = vmax.f32 %v1250_v16, 0.0  ;;  %v2154_v19 = vpop.f32.mrb[44].mxu1 }
 0x38b   :  { %v2155_v20 = vpop.f32.mrb[45].mxu1 }
 0x38c   :  { %v2156_v21 = vadd.f32 %v2155_v20, %v2154_v19  ;;  %v2157_v22 = vpop.f32.mrb[46].mxu1  ;;  %v1391_v23 = vpack.c.bf16 %v1362_v18, %v1361_v17 }
 0x38d   :  { %v2158_v24 = vpop.f32.mrb[47].mxu1 }
 0x38e   :  { %v1255_v25 = vadd.f32 %v2156_v21, %v3027_v49  ;;  %v2159_v26 = vadd.f32 %v2158_v24, %v2157_v22  ;;  %2370 = vmatprep.mubr.bf16.mxu0 %v1391_v23 }
 0x390   :  { %v1258_v27 = vadd.f32 %v2159_v26, %v3027_v49  ;;  %v1363_v28 = vmax.f32 %v1255_v25, 0.0 }
 0x392   :  { %v1364_v29 = vmax.f32 %v1258_v27, 0.0  ;;  %v2160_v30 = vpop.f32.mrb[48].mxu1 }
 0x393   :  { %v2161_v31 = vpop.f32.mrb[49].mxu1 }
 0x394   :  { %v2162_v32 = vadd.f32 %v2161_v31, %v2160_v30  ;;  %v2163_v33 = vpop.f32.mrb[50].mxu1  ;;  %v1392_v34 = vpack.c.bf16 %v1364_v29, %v1363_v28 }
 0x395   :  { %v2164_v35 = vpop.f32.mrb[51].mxu1 }
 0x396   :  { %v1263_v36 = vadd.f32 %v2162_v32, %v3027_v49  ;;  %v2165_v37 = vadd.f32 %v2164_v35, %v2163_v33  ;;  %2371 = vmatmul.mubr.bf16.gmra.mrb[100].mxu0 %v1392_v34 }
 0x398   :  { %v1266_v38 = vadd.f32 %v2165_v37, %v3027_v49  ;;  %v1365_v39 = vmax.f32 %v1263_v36, 0.0 }
 0x39a   :  { %v1366_v40 = vmax.f32 %v1266_v38, 0.0  ;;  %v2166_v41 = vpop.f32.mrb[52].mxu1 }
 0x39b   :  { %v2167_v42 = vpop.f32.mrb[53].mxu1 }
 0x39c   :  { %v2168_v43 = vadd.f32 %v2167_v42, %v2166_v41  ;;  %v2169_v44 = vpop.f32.mrb[54].mxu1  ;;  %v1393_v45 = vpack.c.bf16 %v1366_v40, %v1365_v39 }
 0x39d   :  { %v2170_v46 = vpop.f32.mrb[55].mxu1 }
 0x39e   :  { %v1271_v47 = vadd.f32 %v2168_v43, %v3027_v49  ;;  %v2171_v48 = vadd.f32 %v2170_v46, %v2169_v44  ;;  %2374 = vmatprep.mubr.bf16.mxu0 %v1393_v45 }
 0x3a0   :  { %v1274_v50 = vadd.f32 %v2171_v48, %v3027_v49  ;;  %v1367_v0 = vmax.f32 %v1271_v47, 0.0 }
 0x3a2   :  { %v1368_v51 = vmax.f32 %v1274_v50, 0.0  ;;  %v2172_v52 = vpop.f32.mrb[56].mxu1 }
 0x3a3   :  { %v2173_v1 = vpop.f32.mrb[57].mxu1 }
 0x3a4   :  { %v2174_v53 = vadd.f32 %v2173_v1, %v2172_v52  ;;  %v2175_v54 = vpop.f32.mrb[58].mxu1  ;;  %v1394_v56 = vpack.c.bf16 %v1368_v51, %v1367_v0 }
 0x3a5   :  { %v2176_v57 = vpop.f32.mrb[59].mxu1 }
 0x3a6   :  { %v1279_v3 = vadd.f32 %v2174_v53, %v3027_v49  ;;  %v2177_v58 = vadd.f32 %v2176_v57, %v2175_v54  ;;  %2375 = vmatmul.mubr.bf16.gmra.mrb[104].mxu0 %v1394_v56 }
 0x3a8   :  { %v1282_v59 = vadd.f32 %v2177_v58, %v3027_v49  ;;  %v1369_v60 = vmax.f32 %v1279_v3, 0.0 }
 0x3aa   :  { %v1370_v61 = vmax.f32 %v1282_v59, 0.0  ;;  %v2178_v62 = vpop.f32.mrb[60].mxu1 }
 0x3ab   :  { %v2179_v63 = vpop.f32.mrb[61].mxu1 }
 0x3ac   :  { %v2180_v2 = vadd.f32 %v2179_v63, %v2178_v62  ;;  %v2181_v4 = vpop.f32.mrb[62].mxu1  ;;  %v1395_v5 = vpack.c.bf16 %v1370_v61, %v1369_v60 }
 0x3ad   :  { %v2182_v6 = vpop.f32.mrb[63].mxu1 }
 0x3ae   :  { %v1287_v55 = vadd.f32 %v2180_v2, %v3027_v49  ;;  %v2183_v7 = vadd.f32 %v2182_v6, %v2181_v4  ;;  %2378 = vmatprep.mubr.bf16.mxu0 %v1395_v5  ;;  %v2497_v5 = vld [vmem:[%s3186_s11 + $0x10] sm:$0xff]  }
 0x3af   :  { %2402 = vmatprep.subr.bf16.mxu1 %v2497_v5 }
 0x3b0   :  { %v1290_v8 = vadd.f32 %v2183_v7, %v3027_v49  ;;  %v1371_v9 = vmax.f32 %v1287_v55, 0.0  ;;  %2403 = vmatpush3.bf16.msra.mxu1 %v2497_v5 }
 0x3b2   :  { %v1372_v10 = vmax.f32 %v1290_v8, 0.0  ;;  %v2184_v11 = vpop.f32.mrb[64].mxu1 }
 0x3b3   :  { %v2185_v12 = vpop.f32.mrb[65].mxu1 }
 0x3b4   :  { %v2186_v13 = vadd.f32 %v2185_v12, %v2184_v11  ;;  %v2187_v14 = vpop.f32.mrb[66].mxu1  ;;  %v1396_v15 = vpack.c.bf16 %v1372_v10, %v1371_v9  ;;  %v2498_v12 = vld [vmem:[%s3186_s11 + $0x18] sm:$0xff]  }
 0x3b5   :  { %v2188_v16 = vpop.f32.mrb[67].mxu1  ;;  %2404 = vmatprep.subr.bf16.mxu1 %v2498_v12 }
 0x3b6   :  { %v1295_v17 = vadd.f32 %v2186_v13, %v3027_v49  ;;  %v2189_v18 = vadd.f32 %v2188_v16, %v2187_v14  ;;  %2379 = vmatmul.mubr.bf16.gmra.mrb[108].mxu0 %v1396_v15  ;;  %2405 = vmatpush3.bf16.msra.mxu1 %v2498_v12 }
 0x3b8   :  { %v1298_v19 = vadd.f32 %v2189_v18, %v3027_v49  ;;  %v1373_v20 = vmax.f32 %v1295_v17, 0.0 }
 0x3ba   :  { %v1374_v21 = vmax.f32 %v1298_v19, 0.0  ;;  %v2190_v22 = vpop.f32.mrb[68].mxu1 }
 0x3bb   :  { %v2191_v23 = vpop.f32.mrb[69].mxu1 }
 0x3bc   :  { %v2192_v24 = vadd.f32 %v2191_v23, %v2190_v22  ;;  %v2193_v25 = vpop.f32.mrb[70].mxu1  ;;  %v1397_v26 = vpack.c.bf16 %v1374_v21, %v1373_v20 }
 0x3bd   :  { %v2194_v27 = vpop.f32.mrb[71].mxu1 }
 0x3be   :  { %v1303_v28 = vadd.f32 %v2192_v24, %v3027_v49  ;;  %v2195_v29 = vadd.f32 %v2194_v27, %v2193_v25  ;;  %2382 = vmatprep.mubr.bf16.mxu0 %v1397_v26 }
 0x3c0   :  { %v1306_v30 = vadd.f32 %v2195_v29, %v3027_v49  ;;  %v1375_v31 = vmax.f32 %v1303_v28, 0.0 }
 0x3c2   :  { %v1376_v32 = vmax.f32 %v1306_v30, 0.0  ;;  %v2196_v33 = vpop.f32.mrb[72].mxu1 }
 0x3c3   :  { %v2197_v34 = vpop.f32.mrb[73].mxu1 }
 0x3c4   :  { %v2198_v35 = vadd.f32 %v2197_v34, %v2196_v33  ;;  %v2199_v36 = vpop.f32.mrb[74].mxu1  ;;  %v1398_v37 = vpack.c.bf16 %v1376_v32, %v1375_v31 }
 0x3c5   :  { %v2200_v38 = vpop.f32.mrb[75].mxu1 }
 0x3c6   :  { %v1311_v39 = vadd.f32 %v2198_v35, %v3027_v49  ;;  %v2201_v40 = vadd.f32 %v2200_v38, %v2199_v36  ;;  %2383 = vmatmul.mubr.bf16.gmra.mrb[112].mxu0 %v1398_v37 }
 0x3c8   :  { %v1314_v41 = vadd.f32 %v2201_v40, %v3027_v49  ;;  %v1377_v42 = vmax.f32 %v1311_v39, 0.0  ;;  %v3076_v39 = vld [vmem:[%s3185_s10] ss:$0 sm:$0xff] }
 0x3ca   :  { %v1378_v43 = vmax.f32 %v1314_v41, 0.0  ;;  %v2202_v44 = vpop.f32.mrb[76].mxu1 }
 0x3cb   :  { %v2203_v45 = vpop.f32.mrb[77].mxu1 }
 0x3cc   :  { %v2204_v46 = vadd.f32 %v2203_v45, %v2202_v44  ;;  %v2205_v47 = vpop.f32.mrb[78].mxu1  ;;  %v1399_v48 = vpack.c.bf16 %v1378_v43, %v1377_v42 }
 0x3cd   :  { %v2206_v50 = vpop.f32.mrb[79].mxu1 }
 0x3ce   :  { %v1319_v0 = vadd.f32 %v2204_v46, %v3027_v49  ;;  %v2207_v51 = vadd.f32 %v2206_v50, %v2205_v47  ;;  %2386 = vmatprep.mubr.bf16.mxu0 %v1399_v48 }
 0x3d0   :  { %v1322_v52 = vadd.f32 %v2207_v51, %v3027_v49  ;;  %v1379_v1 = vmax.f32 %v1319_v0, 0.0 }
 0x3d2   :  { %v1380_v53 = vmax.f32 %v1322_v52, 0.0  ;;  %v2208_v54 = vpop.f32.mrb[80].mxu1 }
 0x3d3   :  { %v2209_v56 = vpop.f32.mrb[81].mxu1 }
 0x3d4   :  { %v2210_v57 = vadd.f32 %v2209_v56, %v2208_v54  ;;  %v2211_v3 = vpop.f32.mrb[82].mxu1  ;;  %v1400_v58 = vpack.c.bf16 %v1380_v53, %v1379_v1 }
 0x3d5   :  { %v2212_v59 = vpop.f32.mrb[83].mxu1 }
 0x3d6   :  { %v1327_v60 = vadd.f32 %v2210_v57, %v3027_v49  ;;  %v2213_v61 = vadd.f32 %v2212_v59, %v2211_v3  ;;  %2387 = vmatmul.mubr.bf16.gmra.mrb[116].mxu0 %v1400_v58 }
 0x3d8   :  { %v1330_v62 = vadd.f32 %v2213_v61, %v3027_v49  ;;  %v1381_v63 = vmax.f32 %v1327_v60, 0.0 }
 0x3da   :  { %v1382_v2 = vmax.f32 %v1330_v62, 0.0  ;;  %v2214_v4 = vpop.f32.mrb[84].mxu1 }
 0x3db   :  { %v2215_v6 = vpop.f32.mrb[85].mxu1 }
 0x3dc   :  { %v2216_v55 = vadd.f32 %v2215_v6, %v2214_v4  ;;  %v2217_v7 = vpop.f32.mrb[86].mxu1  ;;  %v1401_v8 = vpack.c.bf16 %v1382_v2, %v1381_v63 }
 0x3dd   :  { %v2218_v9 = vpop.f32.mrb[87].mxu1 }
 0x3de   :  { %v1335_v10 = vadd.f32 %v2216_v55, %v3027_v49  ;;  %v2219_v11 = vadd.f32 %v2218_v9, %v2217_v7  ;;  %2390 = vmatprep.mubr.bf16.mxu0 %v1401_v8 }
 0x3e0   :  { %v1338_v13 = vadd.f32 %v2219_v11, %v3027_v49  ;;  %v1383_v14 = vmax.f32 %v1335_v10, 0.0 }
 0x3e2   :  { %v1384_v15 = vmax.f32 %v1338_v13, 0.0  ;;  %v2220_v16 = vpop.f32.mrb[88].mxu1 }
 0x3e3   :  { %v2221_v17 = vpop.f32.mrb[89].mxu1 }
 0x3e4   :  { %v2222_v18 = vadd.f32 %v2221_v17, %v2220_v16  ;;  %v2223_v19 = vpop.f32.mrb[90].mxu1  ;;  %v1402_v20 = vpack.c.bf16 %v1384_v15, %v1383_v14 }
 0x3e5   :  { %v2224_v21 = vpop.f32.mrb[91].mxu1 }
 0x3e6   :  { %v1343_v22 = vadd.f32 %v2222_v18, %v3027_v49  ;;  %v2225_v23 = vadd.f32 %v2224_v21, %v2223_v19  ;;  %2391 = vmatmul.mubr.bf16.gmra.mrb[120].mxu0 %v1402_v20 }
 0x3e8   :  { %v1346_v24 = vadd.f32 %v2225_v23, %v3027_v49  ;;  %v1385_v25 = vmax.f32 %v1343_v22, 0.0 }
 0x3ea   :  { %v1386_v26 = vmax.f32 %v1346_v24, 0.0  ;;  %v2226_v27 = vpop.f32.mrb[92].mxu1 }
 0x3eb   :  { %v2227_v28 = vpop.f32.mrb[93].mxu1 }
 0x3ec   :  { %v2228_v29 = vadd.f32 %v2227_v28, %v2226_v27  ;;  %v2229_v30 = vpop.f32.mrb[94].mxu1  ;;  %v1403_v31 = vpack.c.bf16 %v1386_v26, %v1385_v25 }
 0x3ed   :  { %v2230_v32 = vpop.f32.mrb[95].mxu1 }
 0x3ee   :  { %v1351_v33 = vadd.f32 %v2228_v29, %v3027_v49  ;;  %v2231_v34 = vadd.f32 %v2230_v32, %v2229_v30  ;;  %2394 = vmatprep.mubr.bf16.mxu0 %v1403_v31 }
 0x3f0   :  { %v1354_v35 = vadd.f32 %v2231_v34, %v3027_v49  ;;  %v1387_v36 = vmax.f32 %v1351_v33, 0.0 }
 0x3f2   :  { %v1388_v37 = vmax.f32 %v1354_v35, 0.0 }
 0x3f4   :  { %v1404_v38 = vpack.c.bf16 %v1388_v37, %v1387_v36 }
 0x3f6   :  { %2395 = vmatmul.mubr.bf16.gmra.mrb[124].mxu0 %v1404_v38 }
 0x459   :  { %v2368_v40 = vpop.f32.mrb[96].mxu0 }
 0x45a   :  { %v1519_v41 = vadd.f32 %v2368_v40, %v3076_v39  ;;  %v1510_v42 = vpop.f32.mrb[97].mxu0 }
 0x45b   :  { %v1511_v43 = vadd.f32 %v3076_v39, %v1510_v42  ;;  %v2369_v44 = vpop.f32.mrb[98].mxu0 }
 0x45c   :  { %v1522_v45 = vadd.f32 %v2369_v44, %v3076_v39  ;;  %v1513_v46 = vpop.f32.mrb[99].mxu0  ;;  %v1639_v47 = vmax.f32 %v1519_v41, 0.0 }
 0x45d   :  { %v1514_v49 = vadd.f32 %v3076_v39, %v1513_v46  ;;  %v1637_v50 = vmax.f32 %v1511_v43, 0.0 }
 0x45e   :  { %v1640_v48 = vmax.f32 %v1522_v45, 0.0 }
 0x45f   :  { %v1638_v0 = vmax.f32 %v1514_v49, 0.0 }
 0x460   :  { %v1670_v51 = vpack.c.bf16 %v1640_v48, %v1639_v47 }
 0x461   :  { %v1669_v52 = vpack.c.bf16 %v1638_v0, %v1637_v50 }
 0x463   :  { %2406 = vmatprep.mubr.msk.bf16.mxu1 %vm406_vm1, %v1669_v52 }
 0x464   :  { %2407 = vmatmul.mubr.msk.bf16.vlgmr.msra.gmra.mrb[96].mxu1 %vm406_vm1, %v1670_v51 }
 0x469   :  { %v2372_v1 = vpop.f32.mrb[100].mxu0 }
 0x46a   :  { %v1535_v53 = vadd.f32 %v2372_v1, %v3076_v39  ;;  %v1526_v54 = vpop.f32.mrb[101].mxu0 }
 0x46b   :  { %v1527_v56 = vadd.f32 %v3076_v39, %v1526_v54  ;;  %v2373_v57 = vpop.f32.mrb[102].mxu0 }
 0x46c   :  { %v1538_v3 = vadd.f32 %v2373_v57, %v3076_v39  ;;  %v1529_v58 = vpop.f32.mrb[103].mxu0  ;;  %v1643_v60 = vmax.f32 %v1535_v53, 0.0 }
 0x46d   :  { %v1530_v59 = vadd.f32 %v3076_v39, %v1529_v58  ;;  %v1641_v62 = vmax.f32 %v1527_v56, 0.0 }
 0x46e   :  { %v1644_v61 = vmax.f32 %v1538_v3, 0.0 }
 0x46f   :  { %v1642_v63 = vmax.f32 %v1530_v59, 0.0 }
 0x470   :  { %v1672_v2 = vpack.c.bf16 %v1644_v61, %v1643_v60 }
 0x471   :  { %v1671_v4 = vpack.c.bf16 %v1642_v63, %v1641_v62 }
 0x473   :  { %2410 = vmatprep.mubr.msk.bf16.mxu1 %vm406_vm1, %v1671_v4 }
 0x474   :  { %2411 = vmatmul.mubr.msk.bf16.gmra.mrb[100].mxu1 %vm406_vm1, %v1672_v2 }
 0x479   :  { %v2376_v5 = vpop.f32.mrb[104].mxu0 }
 0x47a   :  { %v1551_v6 = vadd.f32 %v2376_v5, %v3076_v39  ;;  %v1542_v55 = vpop.f32.mrb[105].mxu0 }
 0x47b   :  { %v1543_v7 = vadd.f32 %v3076_v39, %v1542_v55  ;;  %v2377_v8 = vpop.f32.mrb[106].mxu0 }
 0x47c   :  { %v1554_v9 = vadd.f32 %v2377_v8, %v3076_v39  ;;  %v1545_v10 = vpop.f32.mrb[107].mxu0  ;;  %v1647_v12 = vmax.f32 %v1551_v6, 0.0 }
 0x47d   :  { %v1546_v11 = vadd.f32 %v3076_v39, %v1545_v10  ;;  %v1645_v14 = vmax.f32 %v1543_v7, 0.0 }
 0x47e   :  { %v1648_v13 = vmax.f32 %v1554_v9, 0.0 }
 0x47f   :  { %v1646_v15 = vmax.f32 %v1546_v11, 0.0 }
 0x480   :  { %v1674_v16 = vpack.c.bf16 %v1648_v13, %v1647_v12 }
 0x481   :  { %v1673_v17 = vpack.c.bf16 %v1646_v15, %v1645_v14 }
 0x483   :  { %2414 = vmatprep.mubr.msk.bf16.mxu1 %vm406_vm1, %v1673_v17 }
 0x484   :  { %2415 = vmatmul.mubr.msk.bf16.gmra.mrb[104].mxu1 %vm406_vm1, %v1674_v16 }
 0x489   :  { %v2380_v18 = vpop.f32.mrb[108].mxu0 }
 0x48a   :  { %v1567_v19 = vadd.f32 %v2380_v18, %v3076_v39  ;;  %v1558_v20 = vpop.f32.mrb[109].mxu0 }
 0x48b   :  { %v1559_v21 = vadd.f32 %v3076_v39, %v1558_v20  ;;  %v2381_v22 = vpop.f32.mrb[110].mxu0 }
 0x48c   :  { %v1570_v23 = vadd.f32 %v2381_v22, %v3076_v39  ;;  %v1561_v24 = vpop.f32.mrb[111].mxu0  ;;  %v1651_v26 = vmax.f32 %v1567_v19, 0.0 }
 0x48d   :  { %v1562_v25 = vadd.f32 %v3076_v39, %v1561_v24  ;;  %v1649_v28 = vmax.f32 %v1559_v21, 0.0 }
 0x48e   :  { %v1652_v27 = vmax.f32 %v1570_v23, 0.0 }
 0x48f   :  { %v1650_v29 = vmax.f32 %v1562_v25, 0.0  ;;  %v3129_v25 = vld [vmem:[%s3187_s12] ss:$0 sm:$0xff]  ;;  %s2524_s12 = smov [#allocation2]  }
 0x490   :  { %v1676_v30 = vpack.c.bf16 %v1652_v27, %v1651_v26  ;;  %s1970_s30 = sshll.u32 %s2524_s12, 4  ;;  %s1971_s30 = int_to_ptr.vmem [resolvable:$true] %s1970_s30 }
 0x491   :  { %v1675_v31 = vpack.c.bf16 %v1650_v29, %v1649_v28  ;;  %s2499_s6 = scalar_lea.vmem %s1971_s30, 4096  ;;  %p2504_p1 = scmp.lt.s32.totalorder %s1971_s30, %s1971_s30 }
 0x492   :  { %p2500_p0 = scmp.ne.s32.totalorder %s1971_s30, %s2499_s6  ;;  %p2505_p2 = scmp.lt.s32.totalorder %s2499_s6, %s2499_s6 }
 0x493   :  { %2418 = vmatprep.mubr.msk.bf16.mxu1 %vm406_vm1, %v1675_v31 }
 0x494   :  { %2419 = vmatmul.mubr.msk.bf16.gmra.mrb[108].mxu1 %vm406_vm1, %v1676_v30  ;;  %p2506_p3 = por %p2505_p2, %p2504_p1 }
 0x496   :  { %p2507_p4 = pnand %p2506_p3, %p2500_p0 }
 0x499   :  { %v2384_v32 = vpop.f32.mrb[112].mxu0 }
 0x49a   :  { %v1583_v33 = vadd.f32 %v2384_v32, %v3076_v39  ;;  %v1574_v34 = vpop.f32.mrb[113].mxu0 }
 0x49b   :  { %v1575_v35 = vadd.f32 %v3076_v39, %v1574_v34  ;;  %v2385_v36 = vpop.f32.mrb[114].mxu0 }
 0x49c   :  { %v1586_v37 = vadd.f32 %v2385_v36, %v3076_v39  ;;  %v1577_v38 = vpop.f32.mrb[115].mxu0  ;;  %v1655_v41 = vmax.f32 %v1583_v33, 0.0 }
 0x49d   :  { %v1578_v40 = vadd.f32 %v3076_v39, %v1577_v38  ;;  %v1653_v43 = vmax.f32 %v1575_v35, 0.0 }
 0x49e   :  { %v1656_v42 = vmax.f32 %v1586_v37, 0.0 }
 0x49f   :  { %v1654_v44 = vmax.f32 %v1578_v40, 0.0 }
 0x4a0   :  { %v1678_v45 = vpack.c.bf16 %v1656_v42, %v1655_v41 }
 0x4a1   :  { %v1677_v46 = vpack.c.bf16 %v1654_v44, %v1653_v43 }
 0x4a3   :  { %2422 = vmatprep.mubr.msk.bf16.mxu1 %vm406_vm1, %v1677_v46 }
 0x4a4   :  { %2423 = vmatmul.mubr.msk.bf16.gmra.mrb[112].mxu1 %vm406_vm1, %v1678_v45 }
 0x4a9   :  { %v2388_v49 = vpop.f32.mrb[116].mxu0 }
 0x4aa   :  { %v1599_v47 = vadd.f32 %v2388_v49, %v3076_v39  ;;  %v1590_v48 = vpop.f32.mrb[117].mxu0 }
 0x4ab   :  { %v1591_v50 = vadd.f32 %v3076_v39, %v1590_v48  ;;  %v2389_v0 = vpop.f32.mrb[118].mxu0 }
 0x4ac   :  { %v1602_v51 = vadd.f32 %v2389_v0, %v3076_v39  ;;  %v1593_v52 = vpop.f32.mrb[119].mxu0  ;;  %v1659_v53 = vmax.f32 %v1599_v47, 0.0 }
 0x4ad   :  { %v1594_v1 = vadd.f32 %v3076_v39, %v1593_v52  ;;  %v1657_v56 = vmax.f32 %v1591_v50, 0.0 }
 0x4ae   :  { %v1660_v54 = vmax.f32 %v1602_v51, 0.0 }
 0x4af   :  { %v1658_v57 = vmax.f32 %v1594_v1, 0.0 }
 0x4b0   :  { %v1680_v3 = vpack.c.bf16 %v1660_v54, %v1659_v53 }
 0x4b1   :  { %v1679_v58 = vpack.c.bf16 %v1658_v57, %v1657_v56 }
 0x4b3   :  { %2426 = vmatprep.mubr.msk.bf16.mxu1 %vm406_vm1, %v1679_v58 }
 0x4b4   :  { %2427 = vmatmul.mubr.msk.bf16.gmra.mrb[116].mxu1 %vm406_vm1, %v1680_v3 }
 0x4b9   :  { %v2392_v59 = vpop.f32.mrb[120].mxu0 }
 0x4ba   :  { %v1615_v60 = vadd.f32 %v2392_v59, %v3076_v39  ;;  %v1606_v61 = vpop.f32.mrb[121].mxu0 }
 0x4bb   :  { %v1607_v62 = vadd.f32 %v3076_v39, %v1606_v61  ;;  %v2393_v63 = vpop.f32.mrb[122].mxu0 }
 0x4bc   :  { %v1618_v2 = vadd.f32 %v2393_v63, %v3076_v39  ;;  %v1609_v4 = vpop.f32.mrb[123].mxu0  ;;  %v1663_v6 = vmax.f32 %v1615_v60, 0.0 }
 0x4bd   :  { %v1610_v5 = vadd.f32 %v3076_v39, %v1609_v4  ;;  %v1661_v7 = vmax.f32 %v1607_v62, 0.0 }
 0x4be   :  { %v1664_v55 = vmax.f32 %v1618_v2, 0.0 }
 0x4bf   :  { %v1662_v8 = vmax.f32 %v1610_v5, 0.0 }
 0x4c0   :  { %v1682_v9 = vpack.c.bf16 %v1664_v55, %v1663_v6 }
 0x4c1   :  { %v1681_v10 = vpack.c.bf16 %v1662_v8, %v1661_v7 }
 0x4c3   :  { %2430 = vmatprep.mubr.msk.bf16.mxu1 %vm406_vm1, %v1681_v10 }
 0x4c4   :  { %2431 = vmatmul.mubr.msk.bf16.gmra.mrb[120].mxu1 %vm406_vm1, %v1682_v9 }
 0x4c9   :  { %v2396_v11 = vpop.f32.mrb[124].mxu0 }
 0x4ca   :  { %v1631_v12 = vadd.f32 %v2396_v11, %v3076_v39  ;;  %v1622_v13 = vpop.f32.mrb[125].mxu0 }
 0x4cb   :  { %v1623_v14 = vadd.f32 %v3076_v39, %v1622_v13  ;;  %v2397_v15 = vpop.f32.mrb[126].mxu0 }
 0x4cc   :  { %v1634_v16 = vadd.f32 %v2397_v15, %v3076_v39  ;;  %v1625_v17 = vpop.f32.mrb[127].mxu0  ;;  %v1667_v19 = vmax.f32 %v1631_v12, 0.0 }
 0x4cd   :  { %v1626_v18 = vadd.f32 %v3076_v39, %v1625_v17  ;;  %v1665_v21 = vmax.f32 %v1623_v14, 0.0 }
 0x4ce   :  { %v1668_v20 = vmax.f32 %v1634_v16, 0.0 }
 0x4cf   :  { %v1666_v22 = vmax.f32 %v1626_v18, 0.0 }
 0x4d0   :  { %v1684_v23 = vpack.c.bf16 %v1668_v20, %v1667_v19 }
 0x4d1   :  { %v1683_v24 = vpack.c.bf16 %v1666_v22, %v1665_v21 }
 0x4d3   :  { %2434 = vmatprep.mubr.msk.bf16.mxu1 %vm406_vm1, %v1683_v24 }
 0x4d4   :  { %2435 = vmatmul.mubr.msk.bf16.gmra.mrb[124].mxu1 %vm406_vm1, %v1684_v23 }
 0x537   :  { %v2408_v26 = vpop.f32.mrb[96].mxu1 }
 0x538   :  { %v1815_v27 = vadd.f32 %v2408_v26, %v3129_v25  ;;  %v1806_v28 = vpop.f32.mrb[97].mxu1 }
 0x539   :  { %v1807_v39 = vadd.f32 %v3129_v25, %v1806_v28  ;;  %v2409_v29 = vpop.f32.mrb[98].mxu1 }
 0x53a   :  { %1935 = vst [vmem:[#allocation2 + $0x10] sm:$0xff] %v1815_v27  ;;  %v1818_v30 = vadd.f32 %v2409_v29, %v3129_v25  ;;  %v1809_v31 = vpop.f32.mrb[99].mxu1 }
 0x53b   :  { %1933 = vst [vmem:[#allocation2] sm:$0xff] %v1807_v39  ;;  %v1810_v32 = vadd.f32 %v3129_v25, %v1809_v31 }
 0x53c   :  { %1936 = vst [vmem:[#allocation2 + $0x18] sm:$0xff] %v1818_v30 }
 0x53d   :  { %1934 = vst [vmem:[#allocation2 + $0x8] sm:$0xff] %v1810_v32 }
 0x547   :  { %v2412_v33 = vpop.f32.mrb[100].mxu1 }
 0x548   :  { %v1831_v34 = vadd.f32 %v2412_v33, %v3129_v25  ;;  %v1822_v35 = vpop.f32.mrb[101].mxu1 }
 0x549   :  { %v1823_v36 = vadd.f32 %v3129_v25, %v1822_v35  ;;  %v2413_v37 = vpop.f32.mrb[102].mxu1 }
 0x54a   :  { %1939 = vst [vmem:[#allocation2 + $0x30] sm:$0xff] %v1831_v34  ;;  %v1834_v38 = vadd.f32 %v2413_v37, %v3129_v25  ;;  %v1825_v40 = vpop.f32.mrb[103].mxu1 }
 0x54b   :  { %1937 = vst [vmem:[#allocation2 + $0x20] sm:$0xff] %v1823_v36  ;;  %v1826_v41 = vadd.f32 %v3129_v25, %v1825_v40 }
 0x54c   :  { %1940 = vst [vmem:[#allocation2 + $0x38] sm:$0xff] %v1834_v38 }
 0x54d   :  { %1938 = vst [vmem:[#allocation2 + $0x28] sm:$0xff] %v1826_v41 }
 0x557   :  { %v2416_v42 = vpop.f32.mrb[104].mxu1 }
 0x558   :  { %v1847_v43 = vadd.f32 %v2416_v42, %v3129_v25  ;;  %v1838_v44 = vpop.f32.mrb[105].mxu1 }
 0x559   :  { %v1839_v45 = vadd.f32 %v3129_v25, %v1838_v44  ;;  %v2417_v46 = vpop.f32.mrb[106].mxu1 }
 0x55a   :  { %1943 = vst [vmem:[#allocation2 + $0x50] sm:$0xff] %v1847_v43  ;;  %v1850_v49 = vadd.f32 %v2417_v46, %v3129_v25  ;;  %v1841_v47 = vpop.f32.mrb[107].mxu1 }
 0x55b   :  { %1941 = vst [vmem:[#allocation2 + $0x40] sm:$0xff] %v1839_v45  ;;  %v1842_v48 = vadd.f32 %v3129_v25, %v1841_v47 }
 0x55c   :  { %1944 = vst [vmem:[#allocation2 + $0x58] sm:$0xff] %v1850_v49 }
 0x55d   :  { %1942 = vst [vmem:[#allocation2 + $0x48] sm:$0xff] %v1842_v48 }
 0x567   :  { %v2420_v50 = vpop.f32.mrb[108].mxu1 }
 0x568   :  { %v1863_v0 = vadd.f32 %v2420_v50, %v3129_v25  ;;  %v1854_v51 = vpop.f32.mrb[109].mxu1 }
 0x569   :  { %v1855_v52 = vadd.f32 %v3129_v25, %v1854_v51  ;;  %v2421_v1 = vpop.f32.mrb[110].mxu1 }
 0x56a   :  { %1947 = vst [vmem:[#allocation2 + $0x70] sm:$0xff] %v1863_v0  ;;  %v1866_v53 = vadd.f32 %v2421_v1, %v3129_v25  ;;  %v1857_v54 = vpop.f32.mrb[111].mxu1 }
 0x56b   :  { %1945 = vst [vmem:[#allocation2 + $0x60] sm:$0xff] %v1855_v52  ;;  %v1858_v56 = vadd.f32 %v3129_v25, %v1857_v54 }
 0x56c   :  { %1948 = vst [vmem:[#allocation2 + $0x78] sm:$0xff] %v1866_v53 }
 0x56d   :  { %1946 = vst [vmem:[#allocation2 + $0x68] sm:$0xff] %v1858_v56 }
 0x577   :  { %v2424_v57 = vpop.f32.mrb[112].mxu1 }
 0x578   :  { %v1879_v3 = vadd.f32 %v2424_v57, %v3129_v25  ;;  %v1870_v58 = vpop.f32.mrb[113].mxu1 }
 0x579   :  { %v1871_v59 = vadd.f32 %v3129_v25, %v1870_v58  ;;  %v2425_v60 = vpop.f32.mrb[114].mxu1 }
 0x57a   :  { %1951 = vst [vmem:[#allocation2 + $0x90] sm:$0xff] %v1879_v3  ;;  %v1882_v61 = vadd.f32 %v2425_v60, %v3129_v25  ;;  %v1873_v62 = vpop.f32.mrb[115].mxu1 }
 0x57b   :  { %1949 = vst [vmem:[#allocation2 + $0x80] sm:$0xff] %v1871_v59  ;;  %v1874_v63 = vadd.f32 %v3129_v25, %v1873_v62 }
 0x57c   :  { %1952 = vst [vmem:[#allocation2 + $0x98] sm:$0xff] %v1882_v61 }
 0x57d   :  { %1950 = vst [vmem:[#allocation2 + $0x88] sm:$0xff] %v1874_v63 }
 0x587   :  { %v2428_v2 = vpop.f32.mrb[116].mxu1 }
 0x588   :  { %v1895_v4 = vadd.f32 %v2428_v2, %v3129_v25  ;;  %v1886_v5 = vpop.f32.mrb[117].mxu1 }
 0x589   :  { %v1887_v6 = vadd.f32 %v3129_v25, %v1886_v5  ;;  %v2429_v55 = vpop.f32.mrb[118].mxu1 }
 0x58a   :  { %1955 = vst [vmem:[#allocation2 + $0xb0] sm:$0xff] %v1895_v4  ;;  %v1898_v7 = vadd.f32 %v2429_v55, %v3129_v25  ;;  %v1889_v8 = vpop.f32.mrb[119].mxu1 }
 0x58b   :  { %1953 = vst [vmem:[#allocation2 + $0xa0] sm:$0xff] %v1887_v6  ;;  %v1890_v9 = vadd.f32 %v3129_v25, %v1889_v8 }
 0x58c   :  { %1956 = vst [vmem:[#allocation2 + $0xb8] sm:$0xff] %v1898_v7 }
 0x58d   :  { %1954 = vst [vmem:[#allocation2 + $0xa8] sm:$0xff] %v1890_v9 }
 0x597   :  { %v2432_v10 = vpop.f32.mrb[120].mxu1 }
 0x598   :  { %v1911_v11 = vadd.f32 %v2432_v10, %v3129_v25  ;;  %v1902_v12 = vpop.f32.mrb[121].mxu1 }
 0x599   :  { %v1903_v13 = vadd.f32 %v3129_v25, %v1902_v12  ;;  %v2433_v14 = vpop.f32.mrb[122].mxu1 }
 0x59a   :  { %1959 = vst [vmem:[#allocation2 + $0xd0] sm:$0xff] %v1911_v11  ;;  %v1914_v15 = vadd.f32 %v2433_v14, %v3129_v25  ;;  %v1905_v16 = vpop.f32.mrb[123].mxu1 }
 0x59b   :  { %1957 = vst [vmem:[#allocation2 + $0xc0] sm:$0xff] %v1903_v13  ;;  %v1906_v17 = vadd.f32 %v3129_v25, %v1905_v16 }
 0x59c   :  { %1960 = vst [vmem:[#allocation2 + $0xd8] sm:$0xff] %v1914_v15 }
 0x59d   :  { %1958 = vst [vmem:[#allocation2 + $0xc8] sm:$0xff] %v1906_v17 }
 0x5a7   :  { %v2436_v18 = vpop.f32.mrb[124].mxu1 }
 0x5a8   :  { %v1927_v19 = vadd.f32 %v2436_v18, %v3129_v25  ;;  %v1918_v20 = vpop.f32.mrb[125].mxu1 }
 0x5a9   :  { %v1919_v21 = vadd.f32 %v3129_v25, %v1918_v20  ;;  %v2437_v22 = vpop.f32.mrb[126].mxu1 }
 0x5aa   :  { %1963 = vst [vmem:[#allocation2 + $0xf0] sm:$0xff] %v1927_v19  ;;  %v1930_v23 = vadd.f32 %v2437_v22, %v3129_v25  ;;  %v1921_v24 = vpop.f32.mrb[127].mxu1 }
 0x5ab   :  { %1961 = vst [vmem:[#allocation2 + $0xe0] sm:$0xff] %v1919_v21  ;;  %v1922_v26 = vadd.f32 %v3129_v25, %v1921_v24 }
 0x5ac   :  { %1964 = vst [vmem:[#allocation2 + $0xf8] sm:$0xff] %v1930_v23 }
 0x5ad   :  { %1962 = vst [vmem:[#allocation2 + $0xe8] sm:$0xff] %v1922_v26 }
 0x5ae   :  { %2510 = shalt.err (!%p2507_p4)
}
 0x5af   :  { %s2511_s16 = scalar_lea.hbm %s3188_s13, 4096 }
 0x5b0   :  { %p2512_p5 = scmp.ne.s32.totalorder %s3188_s13, %s2511_s16  ;;  %p2515_p6 = scmp.lt.u32.totalorder %s2511_s16, %s3188_s13 }
 0x5b2   :  { %p2517_p7 = pnand %p2515_p6, %p2512_p5 }
 0x5b4   :  { %2520 = shalt.err (!%p2517_p7)
}
 0x5b5   :  { %s2525_s18 = smov 128   ;;  %s2526_s19 = smov 8  }
 0x5b6   :  { %1976 = dma.vmem_to_hbm [thread:$0]  %s1971_s30, 4096, %s3188_s13, [#allocation3], %s2525_s18, %s2525_s18, %s2526_s19  }
 0x5b7   :  { %2521 = dma.done.wait [#allocation3], 4096  }
 0x5b8   :  { %2522 = vsyncadd [#allocation3], 4294963200 }
 0x5b9   :  { %1980 = vsyncpa [#allocation3], 1 }

</bundles_post_ra>
